<compile_context>
chip_gen: v5e
topology: v5e:2x2
jax: 0.10.0
libtpu: 0.0.40
codegen_flags: <defaults>
</compile_context>

<pallas_src>
import numpy as np
import jax
import jax.numpy as jnp
from jax.experimental import pallas as pl
from jax.experimental.pallas import tpu as pltpu

# Fixed hyper-parameters from the PyTorch module.
WINDOW = 5
KSIZE = 2 * WINDOW + 1          # 11x11 conv kernel
LAYER_CNN = 2
ALPHA = 0.1                     # leaky_relu negative slope (module uses 0.1)
F_T = 21                        # num_features_xt


# --------------------------------------------------------------------------
# Pallas kernel factory: whole DTPGCN forward in one call, 4 operands total.
# --------------------------------------------------------------------------
def make_dtpgcn_kernel(Na, L, Fxd, d8, d4, D):
    n_out = Na + L + 4
    kcat = d4 + F_T + 1

    # Weight-slab row offsets (must match pack_params).
    r_w1 = 0
    r_w2 = r_w1 + Fxd
    r_wcat = r_w2 + d8
    r_b1 = r_wcat + kcat
    r_b2 = r_b1 + 1
    r_bconv = r_b2 + 1
    r_band = r_bconv + LAYER_CNN

    def kernel(act_ref, w_ref, tconv_ref, out_ref):
        f32 = jnp.float32
        hp = jax.lax.Precision.HIGHEST
        dot = lambda a, b: jnp.dot(a, b, precision=hp, preferred_element_type=f32)
        lrelu = lambda v: jnp.maximum(v, ALPHA * v)

        # ---------------- unpack activation slab ----------------
        a_hat = act_ref[0:Na, 0:Na]                       # sym-normalized adjacency
        x = act_ref[Na:2 * Na, 0:Fxd]                     # drug atom features
        tgt = act_ref[2 * Na:2 * Na + L, 0:F_T]           # protein one-hot
        props = act_ref[2 * Na + L:2 * Na + L + 4, 0:1]   # 4 property scalars

        # ---------------- unpack weight slab ----------------
        w1 = w_ref[r_w1:r_w1 + Fxd, 0:d8]
        w2 = w_ref[r_w2:r_w2 + d8, 0:d4]
        wcat = w_ref[r_wcat:r_wcat + kcat, :]             # [Wg; Wprot; Wmlp]
        b1 = w_ref[r_b1:r_b1 + 1, 0:d8]
        b2 = w_ref[r_b2:r_b2 + 1, 0:d4]
        bconv = w_ref[r_bconv:r_bconv + LAYER_CNN, 0:F_T] # pre-broadcast conv biases
        band = w_ref[r_band:r_band + n_out, :]            # per-output-row bias band

        # ---------------- drug / GCN branch ----------------
        h = dot(a_hat, dot(x, w1)) + b1
        h = jnp.maximum(h, 0.0)                           # ReLU
        h = dot(a_hat, dot(h, w2)) + b2
        h = jnp.maximum(h, 0.0)                           # (Na, d4)

        # ---------------- protein / CNN branch ----------------
        cur = tgt                                         # (L, F_T)
        zrows = jnp.zeros((WINDOW, F_T), f32)
        for layer in range(LAYER_CNN):                    # static unroll (2 layers)
            p = jnp.concatenate([zrows, cur, zrows], axis=0)        # (L+2W, F_T)
            # im2col: 11 row-shifted slices side-by-side along lanes.
            lhs = jnp.concatenate([p[di:di + L, :] for di in range(KSIZE)],
                                  axis=1)                           # (L, K*F_T)
            # One fused MXU matmul per layer against the banded Toeplitz slab.
            acc = dot(lhs, tconv_ref[layer]) + bconv[layer:layer + 1, :]
            cur = lrelu(acc)                                        # (L, F_T)

        # ---------------- fused output projection ----------------
        # Block-diagonal LHS: rows [0,Na) use Wg cols, [Na,Na+L) use Wprot
        # cols, [Na+L,Na+L+4) use Wmlp col.  One matmul writes all outputs.
        u = jnp.concatenate([
            jnp.concatenate([h, jnp.zeros((Na, F_T + 1), f32)], axis=1),
            jnp.concatenate([jnp.zeros((L, d4), f32), cur,
                             jnp.zeros((L, 1), f32)], axis=1),
            jnp.concatenate([jnp.zeros((4, d4 + F_T), f32), props], axis=1),
        ], axis=0)                                        # (Na+L+4, kcat)
        out = dot(u, wcat) + band                         # (Na+L+4, D)

        # leaky_relu only on the amino row band; single packed store.
        row = jax.lax.broadcasted_iota(jnp.int32, (n_out, D), 0)
        amino_rows = (row >= Na) & (row < Na + L)
        out_ref[...] = jnp.where(amino_rows, lrelu(out), out)

    return kernel


# --------------------------------------------------------------------------
# Host-side wrapper / parameter & activation packing.
# --------------------------------------------------------------------------
def dtpgcn_forward(a_hat, x_smile, target, props_col, w_slab, tconv):
    Na, L = a_hat.shape[0], target.shape[0]
    Fxd = x_smile.shape[1]
    D = w_slab.shape[1]
    d8, d4 = D // 8, D // 4
    assert w_slab.shape[0] == Fxd + d8 + (d4 + F_T + 1) + 2 + LAYER_CNN + (Na + L + 4)

    # Pack the 4 data inputs into one lane-padded activation slab (1 DMA).
    wact = max(Na, Fxd, F_T, 1)
    pad = lambda m: jnp.pad(m, ((0, 0), (0, wact - m.shape[1])))
    act = jnp.concatenate([pad(a_hat), pad(x_smile), pad(target), pad(props_col)],
                          axis=0)

    vmem = pl.BlockSpec(memory_space=pltpu.MemorySpace.VMEM)
    out_slab = pl.pallas_call(
        make_dtpgcn_kernel(Na, L, Fxd, d8, d4, D),
        out_shape=jax.ShapeDtypeStruct((Na + L + 4, D), jnp.float32),
        in_specs=[vmem, vmem, vmem],
        out_specs=vmem,
    )(act, w_slab, tconv)
    # TODO(synk): a batch of (drug, protein) samples would add a leading
    # "parallel" grid dimension (uses both v7x TensorCores); the module's
    # forward is single-sample so the call stays ungridded.
    return out_slab[0:Na], out_slab[Na:Na + L], out_slab[Na + L:]


def gcn_normalized_dense_adj(edge_index, num_nodes):
    # TODO(synk): edge_index -> dense symmetric-normalized adjacency is a
    # data-dependent scatter with no clean tiny-kernel Pallas equivalent;
    # it is kept in plain JAX and the dense A_hat is fed to the kernel.
    src, dst = edge_index[0], edge_index[1]
    a = jnp.zeros((num_nodes, num_nodes), jnp.float32).at[dst, src].add(1.0)
    a = a + jnp.eye(num_nodes, dtype=jnp.float32)          # add self loops
    deg = jnp.sum(a, axis=1)
    dinv = jnp.where(deg > 0.0, jax.lax.rsqrt(deg), 0.0)
    return dinv[:, None] * a * dinv[None, :]


def init_raw_params(key, num_features_xd, latent_dim):
    d8, d4 = latent_dim // 8, latent_dim // 4
    keys = iter(jax.random.split(key, 16))

    def uniform(shape, bound):
        return jax.random.uniform(next(keys), shape, jnp.float32, -bound, bound)

    def linear(in_f, out_f):               # stored (in, out): kernel does x @ W
        b = 1.0 / float(in_f) ** 0.5
        return uniform((in_f, out_f), b), uniform((1, out_f), b)

    w1, b1 = linear(num_features_xd, d8)   # conv1_xd (GCNConv weight + bias)
    w2, b2 = linear(d8, d4)                # conv2_xd
    wg, bg = linear(d4, latent_dim)        # fc_g2_d
    cb = 1.0 / float(KSIZE)
    wconv = uniform((LAYER_CNN, KSIZE, KSIZE), cb)   # conv_layers weights
    bconv = uniform((LAYER_CNN,), cb)                # conv_layers biases
    wprot, bprot = linear(F_T, latent_dim)           # W_prot
    wmlp, bmlp = linear(1, latent_dim)               # mlp: Linear(1, D)
    return dict(w1=w1, b1=b1, w2=w2, b2=b2, wg=wg, bg=bg,
                wconv=wconv, bconv=bconv, wprot=wprot, bprot=bprot,
                wmlp=wmlp, bmlp=bmlp)


def build_conv_toeplitz(wconv):
    """(LAYER_CNN, K, K) conv weights -> (LAYER_CNN, K*F_T, F_T) banded
    Toeplitz slab.  Block di holds the banded (F_T, F_T) matrix of row tap di
    (truncated rows encode the column zero-padding), so each conv layer is a
    single (L, K*F_T) @ (K*F_T, F_T) MXU matmul against the im2col LHS."""
    w = np.asarray(jax.device_get(wconv), dtype=np.float32)
    t = np.zeros((LAYER_CNN, KSIZE, F_T, F_T), np.float32)
    for dj in range(KSIZE):
        for j in range(F_T):
            c = j + dj - WINDOW
            if 0 <= c < F_T:
                t[:, :, c, j] = w[:, :, dj]
    return jnp.asarray(t.reshape(LAYER_CNN, KSIZE * F_T, F_T))


def pack_params(raw, latent_dim, num_nodes, seq_len):
    """Pack all weights/biases into one lane-padded (rows, D) slab plus the
    conv Toeplitz slab.  Conv biases are pre-broadcast to width F_T and the
    per-output-row bias band is pre-broadcast to (Na+L+4, D)."""
    D = latent_dim
    padw = lambda m: jnp.pad(m, ((0, 0), (0, D - m.shape[1])))
    wcat = jnp.concatenate([raw["wg"], raw["wprot"], raw["wmlp"]], axis=0)
    bconv_rows = jnp.broadcast_to(raw["bconv"][:, None], (LAYER_CNN, F_T))
    bias_band = jnp.concatenate([
        jnp.broadcast_to(raw["bg"], (num_nodes, D)),
        jnp.broadcast_to(raw["bprot"], (seq_len, D)),
        jnp.broadcast_to(raw["bmlp"], (4, D)),
    ], axis=0)
    w_slab = jnp.concatenate([
        padw(raw["w1"]), padw(raw["w2"]), wcat,
        padw(raw["b1"]), padw(raw["b2"]), padw(bconv_rows),
        bias_band,
    ], axis=0)
    return w_slab, build_conv_toeplitz(raw["wconv"])


# --------------------------------------------------------------------------
# Plain-JAX reference (same math, standard XLA ops) for a correctness check.
# --------------------------------------------------------------------------
def dtpgcn_reference(a_hat, x_smile, target, props_col, raw):
    hp = jax.lax.Precision.HIGHEST
    relu = lambda v: jnp.maximum(v, 0.0)
    lrelu = lambda v: jnp.maximum(v, ALPHA * v)
    h = relu(jnp.dot(a_hat, jnp.dot(x_smile, raw["w1"], precision=hp),
                     precision=hp) + raw["b1"])
    h = relu(jnp.dot(a_hat, jnp.dot(h, raw["w2"], precision=hp),
                     precision=hp) + raw["b2"])
    x_drug = jnp.dot(h, raw["wg"], precision=hp) + raw["bg"]

    cur = target
    for l in range(LAYER_CNN):
        out = jax.lax.conv_general_dilated(
            cur[None, None], raw["wconv"][l][None, None],
            window_strides=(1, 1),
            padding=((WINDOW, WINDOW), (WINDOW, WINDOW)),
            dimension_numbers=("NCHW", "OIHW", "NCHW"),
            precision=hp)[0, 0] + raw["bconv"][l]
        cur = lrelu(out)
    amino = lrelu(jnp.dot(cur, raw["wprot"], precision=hp) + raw["bprot"])
    prop_vec = props_col * raw["wmlp"] + raw["bmlp"]
    return x_drug, amino, prop_vec


if __name__ == "__main__":
    latent_dim = 32          # -> latent_dim//8 = 4, latent_dim//4 = 8
    num_features_xd = 16     # drug atom feature width
    Na = 8                   # atoms in the molecular graph
    L = 16                   # protein sequence length

    key = jax.random.PRNGKey(0)
    k_x, k_t, k_p, k_w = jax.random.split(key, 4)

    # drug graph: Na-node ring, undirected edge_index (2, 2*Na)
    idx = jnp.arange(Na)
    nxt = (idx + 1) % Na
    edge_index = jnp.stack([jnp.concatenate([idx, nxt]),
                            jnp.concatenate([nxt, idx])])
    x_smile = jax.random.normal(k_x, (Na, num_features_xd), jnp.float32)

    # protein: (L, 21) one-hot target matrix (x_target in the module)
    target = jax.nn.one_hot(jax.random.randint(k_t, (L,), 0, F_T), F_T,
                            dtype=jnp.float32)

    # molecular properties: prop[0][0..3]
    props = jax.random.uniform(k_p, (1, 4), jnp.float32)
    props_col = props[0].reshape(4, 1)

    raw = init_raw_params(k_w, num_features_xd, latent_dim)
    w_slab, tconv = pack_params(raw, latent_dim, Na, L)
    a_hat = gcn_normalized_dense_adj(edge_index, Na)

    x_drug, amino_vector, prop_vector = dtpgcn_forward(
        a_hat, x_smile, target, props_col, w_slab, tconv)
    jax.block_until_ready((x_drug, amino_vector, prop_vector))

    assert x_drug.shape == (Na, latent_dim)
    assert amino_vector.shape == (L, latent_dim)
    assert prop_vector.shape == (4, latent_dim)

    ref = dtpgcn_reference(a_hat, x_smile, target, props_col, raw)
    for name, got, want in zip(("x_drug", "amino_vector", "prop_vector"),
                               (x_drug, amino_vector, prop_vector), ref):
        err = float(jnp.max(jnp.abs(got - want)))
        assert err < 1e-4, f"{name} mismatch: max abs err {err}"

    print("KERNEL_OK")
</pallas_src>

<mosaic_0001>
module attributes {stable_mosaic.version = 11 : i64} {
  func.func @kernel(%arg0: memref<36x21xf32, #tpu.memory_space<vmem>>, %arg1: memref<82x32xf32, #tpu.memory_space<vmem>>, %arg2: memref<2x231x21xf32, #tpu.memory_space<vmem>>, %arg3: memref<28x32xf32, #tpu.memory_space<vmem>>) attributes {dimension_semantics = [], scalar_prefetch = 0 : i64, scratch_operands = 0 : i64, tpu.core_type = #tpu.core_type<tc>} {
    %c0 = arith.constant 0 : index
    %c0_0 = arith.constant 0 : index
    %0 = vector.load %arg0[%c0, %c0_0] : memref<36x21xf32, #tpu.memory_space<vmem>>, vector<8x8xf32>
    %c8 = arith.constant 8 : index
    %c0_1 = arith.constant 0 : index
    %1 = vector.load %arg0[%c8, %c0_1] : memref<36x21xf32, #tpu.memory_space<vmem>>, vector<8x16xf32>
    %c16 = arith.constant 16 : index
    %c0_2 = arith.constant 0 : index
    %2 = vector.load %arg0[%c16, %c0_2] : memref<36x21xf32, #tpu.memory_space<vmem>>, vector<16x21xf32>
    %c32 = arith.constant 32 : index
    %c0_3 = arith.constant 0 : index
    %3 = vector.load %arg0[%c32, %c0_3] : memref<36x21xf32, #tpu.memory_space<vmem>>, vector<4x1xf32>
    %c0_4 = arith.constant 0 : index
    %c0_5 = arith.constant 0 : index
    %4 = vector.load %arg1[%c0_4, %c0_5] : memref<82x32xf32, #tpu.memory_space<vmem>>, vector<16x4xf32>
    %c16_6 = arith.constant 16 : index
    %c0_7 = arith.constant 0 : index
    %5 = vector.load %arg1[%c16_6, %c0_7] : memref<82x32xf32, #tpu.memory_space<vmem>>, vector<4x8xf32>
    %c20 = arith.constant 20 : index
    %c0_8 = arith.constant 0 : index
    %6 = vector.load %arg1[%c20, %c0_8] : memref<82x32xf32, #tpu.memory_space<vmem>>, vector<30x32xf32>
    %c50 = arith.constant 50 : index
    %c0_9 = arith.constant 0 : index
    %7 = vector.load %arg1[%c50, %c0_9] : memref<82x32xf32, #tpu.memory_space<vmem>>, vector<1x4xf32>
    %c51 = arith.constant 51 : index
    %c0_10 = arith.constant 0 : index
    %8 = vector.load %arg1[%c51, %c0_10] : memref<82x32xf32, #tpu.memory_space<vmem>>, vector<1x8xf32>
    %c52 = arith.constant 52 : index
    %c0_11 = arith.constant 0 : index
    %9 = vector.load %arg1[%c52, %c0_11] : memref<82x32xf32, #tpu.memory_space<vmem>>, vector<2x21xf32>
    %c54 = arith.constant 54 : index
    %c0_12 = arith.constant 0 : index
    %10 = vector.load %arg1[%c54, %c0_12] : memref<82x32xf32, #tpu.memory_space<vmem>>, vector<28x32xf32>
    %cst = arith.constant dense<0.000000e+00> : vector<8x4xf32>
    %11 = tpu.matmul %1, %4, %cst {dimension_numbers = #tpu.dot_dimension_numbers<[1], [0], [0], [1], [0, 0, 1, 1], [], []>, precision = #tpu.contract_precision<fp32>} : vector<8x16xf32>, vector<16x4xf32>, vector<8x4xf32> -> vector<8x4xf32>
    %cst_13 = arith.constant dense<0.000000e+00> : vector<8x4xf32>
    %12 = tpu.matmul %0, %11, %cst_13 {dimension_numbers = #tpu.dot_dimension_numbers<[1], [0], [0], [1], [0, 0, 1, 1], [], []>, precision = #tpu.contract_precision<fp32>} : vector<8x8xf32>, vector<8x4xf32>, vector<8x4xf32> -> vector<8x4xf32>
    %13 = vector.broadcast %7 : vector<1x4xf32> to vector<8x4xf32>
    %14 = arith.addf %12, %13 : vector<8x4xf32>
    %cst_14 = arith.constant 0.000000e+00 : f32
    %15 = vector.broadcast %cst_14 : f32 to vector<8x4xf32>
    %16 = arith.maximumf %14, %15 : vector<8x4xf32>
    %cst_15 = arith.constant dense<0.000000e+00> : vector<8x8xf32>
    %17 = tpu.matmul %16, %5, %cst_15 {dimension_numbers = #tpu.dot_dimension_numbers<[1], [0], [0], [1], [0, 0, 1, 1], [], []>, precision = #tpu.contract_precision<fp32>} : vector<8x4xf32>, vector<4x8xf32>, vector<8x8xf32> -> vector<8x8xf32>
    %cst_16 = arith.constant dense<0.000000e+00> : vector<8x8xf32>
    %18 = tpu.matmul %0, %17, %cst_16 {dimension_numbers = #tpu.dot_dimension_numbers<[1], [0], [0], [1], [0, 0, 1, 1], [], []>, precision = #tpu.contract_precision<fp32>} : vector<8x8xf32>, vector<8x8xf32>, vector<8x8xf32> -> vector<8x8xf32>
    %19 = vector.broadcast %8 : vector<1x8xf32> to vector<8x8xf32>
    %20 = arith.addf %18, %19 : vector<8x8xf32>
    %cst_17 = arith.constant 0.000000e+00 : f32
    %21 = vector.broadcast %cst_17 : f32 to vector<8x8xf32>
    %22 = arith.maximumf %20, %21 : vector<8x8xf32>
    %cst_18 = arith.constant 0.000000e+00 : f32
    %23 = vector.broadcast %cst_18 : f32 to vector<5x21xf32>
    %24 = tpu.concatenate %23, %2, %23 in 0 : vector<5x21xf32>, vector<16x21xf32>, vector<5x21xf32> -> vector<26x21xf32>
    %25 = vector.extract_strided_slice %24 {offsets = [0, 0], sizes = [16, 21], strides = [1, 1]} : vector<26x21xf32> to vector<16x21xf32>
    %26 = vector.extract_strided_slice %24 {offsets = [1, 0], sizes = [16, 21], strides = [1, 1]} : vector<26x21xf32> to vector<16x21xf32>
    %27 = vector.extract_strided_slice %24 {offsets = [2, 0], sizes = [16, 21], strides = [1, 1]} : vector<26x21xf32> to vector<16x21xf32>
    %28 = vector.extract_strided_slice %24 {offsets = [3, 0], sizes = [16, 21], strides = [1, 1]} : vector<26x21xf32> to vector<16x21xf32>
    %29 = vector.extract_strided_slice %24 {offsets = [4, 0], sizes = [16, 21], strides = [1, 1]} : vector<26x21xf32> to vector<16x21xf32>
    %30 = vector.extract_strided_slice %24 {offsets = [5, 0], sizes = [16, 21], strides = [1, 1]} : vector<26x21xf32> to vector<16x21xf32>
    %31 = vector.extract_strided_slice %24 {offsets = [6, 0], sizes = [16, 21], strides = [1, 1]} : vector<26x21xf32> to vector<16x21xf32>
    %32 = vector.extract_strided_slice %24 {offsets = [7, 0], sizes = [16, 21], strides = [1, 1]} : vector<26x21xf32> to vector<16x21xf32>
    %33 = vector.extract_strided_slice %24 {offsets = [8, 0], sizes = [16, 21], strides = [1, 1]} : vector<26x21xf32> to vector<16x21xf32>
    %34 = vector.extract_strided_slice %24 {offsets = [9, 0], sizes = [16, 21], strides = [1, 1]} : vector<26x21xf32> to vector<16x21xf32>
    %35 = vector.extract_strided_slice %24 {offsets = [10, 0], sizes = [16, 21], strides = [1, 1]} : vector<26x21xf32> to vector<16x21xf32>
    %36 = tpu.concatenate %25, %26, %27, %28, %29, %30, %31, %32, %33, %34, %35 in 1 : vector<16x21xf32>, vector<16x21xf32>, vector<16x21xf32>, vector<16x21xf32>, vector<16x21xf32>, vector<16x21xf32>, vector<16x21xf32>, vector<16x21xf32>, vector<16x21xf32>, vector<16x21xf32>, vector<16x21xf32> -> vector<16x231xf32>
    %c0_19 = arith.constant 0 : index
    %c0_20 = arith.constant 0 : index
    %c0_21 = arith.constant 0 : index
    %37 = vector.load %arg2[%c0_19, %c0_20, %c0_21] : memref<2x231x21xf32, #tpu.memory_space<vmem>>, vector<1x231x21xf32>
    %38 = vector.shape_cast %37 : vector<1x231x21xf32> to vector<231x21xf32>
    %cst_22 = arith.constant dense<0.000000e+00> : vector<16x21xf32>
    %39 = tpu.matmul %36, %38, %cst_22 {dimension_numbers = #tpu.dot_dimension_numbers<[1], [0], [0], [1], [0, 0, 1, 1], [], []>, precision = #tpu.contract_precision<fp32>} : vector<16x231xf32>, vector<231x21xf32>, vector<16x21xf32> -> vector<16x21xf32>
    %40 = vector.extract_strided_slice %9 {offsets = [0, 0], sizes = [1, 21], strides = [1, 1]} : vector<2x21xf32> to vector<1x21xf32>
    %41 = vector.broadcast %40 : vector<1x21xf32> to vector<16x21xf32>
    %42 = arith.addf %39, %41 : vector<16x21xf32>
    %cst_23 = arith.constant 1.000000e-01 : f32
    %43 = vector.broadcast %cst_23 : f32 to vector<16x21xf32>
    %44 = arith.mulf %43, %42 : vector<16x21xf32>
    %45 = arith.maximumf %42, %44 : vector<16x21xf32>
    %46 = tpu.concatenate %23, %45, %23 in 0 : vector<5x21xf32>, vector<16x21xf32>, vector<5x21xf32> -> vector<26x21xf32>
    %47 = vector.extract_strided_slice %46 {offsets = [0, 0], sizes = [16, 21], strides = [1, 1]} : vector<26x21xf32> to vector<16x21xf32>
    %48 = vector.extract_strided_slice %46 {offsets = [1, 0], sizes = [16, 21], strides = [1, 1]} : vector<26x21xf32> to vector<16x21xf32>
    %49 = vector.extract_strided_slice %46 {offsets = [2, 0], sizes = [16, 21], strides = [1, 1]} : vector<26x21xf32> to vector<16x21xf32>
    %50 = vector.extract_strided_slice %46 {offsets = [3, 0], sizes = [16, 21], strides = [1, 1]} : vector<26x21xf32> to vector<16x21xf32>
    %51 = vector.extract_strided_slice %46 {offsets = [4, 0], sizes = [16, 21], strides = [1, 1]} : vector<26x21xf32> to vector<16x21xf32>
    %52 = vector.extract_strided_slice %46 {offsets = [5, 0], sizes = [16, 21], strides = [1, 1]} : vector<26x21xf32> to vector<16x21xf32>
    %53 = vector.extract_strided_slice %46 {offsets = [6, 0], sizes = [16, 21], strides = [1, 1]} : vector<26x21xf32> to vector<16x21xf32>
    %54 = vector.extract_strided_slice %46 {offsets = [7, 0], sizes = [16, 21], strides = [1, 1]} : vector<26x21xf32> to vector<16x21xf32>
    %55 = vector.extract_strided_slice %46 {offsets = [8, 0], sizes = [16, 21], strides = [1, 1]} : vector<26x21xf32> to vector<16x21xf32>
    %56 = vector.extract_strided_slice %46 {offsets = [9, 0], sizes = [16, 21], strides = [1, 1]} : vector<26x21xf32> to vector<16x21xf32>
    %57 = vector.extract_strided_slice %46 {offsets = [10, 0], sizes = [16, 21], strides = [1, 1]} : vector<26x21xf32> to vector<16x21xf32>
    %58 = tpu.concatenate %47, %48, %49, %50, %51, %52, %53, %54, %55, %56, %57 in 1 : vector<16x21xf32>, vector<16x21xf32>, vector<16x21xf32>, vector<16x21xf32>, vector<16x21xf32>, vector<16x21xf32>, vector<16x21xf32>, vector<16x21xf32>, vector<16x21xf32>, vector<16x21xf32>, vector<16x21xf32> -> vector<16x231xf32>
    %c1 = arith.constant 1 : index
    %c0_24 = arith.constant 0 : index
    %c0_25 = arith.constant 0 : index
    %59 = vector.load %arg2[%c1, %c0_24, %c0_25] : memref<2x231x21xf32, #tpu.memory_space<vmem>>, vector<1x231x21xf32>
    %60 = vector.shape_cast %59 : vector<1x231x21xf32> to vector<231x21xf32>
    %cst_26 = arith.constant dense<0.000000e+00> : vector<16x21xf32>
    %61 = tpu.matmul %58, %60, %cst_26 {dimension_numbers = #tpu.dot_dimension_numbers<[1], [0], [0], [1], [0, 0, 1, 1], [], []>, precision = #tpu.contract_precision<fp32>} : vector<16x231xf32>, vector<231x21xf32>, vector<16x21xf32> -> vector<16x21xf32>
    %62 = vector.extract_strided_slice %9 {offsets = [1, 0], sizes = [1, 21], strides = [1, 1]} : vector<2x21xf32> to vector<1x21xf32>
    %63 = vector.broadcast %62 : vector<1x21xf32> to vector<16x21xf32>
    %64 = arith.addf %61, %63 : vector<16x21xf32>
    %cst_27 = arith.constant 1.000000e-01 : f32
    %65 = vector.broadcast %cst_27 : f32 to vector<16x21xf32>
    %66 = arith.mulf %65, %64 : vector<16x21xf32>
    %67 = arith.maximumf %64, %66 : vector<16x21xf32>
    %cst_28 = arith.constant 0.000000e+00 : f32
    %68 = vector.broadcast %cst_28 : f32 to vector<8x22xf32>
    %69 = tpu.concatenate %22, %68 in 1 : vector<8x8xf32>, vector<8x22xf32> -> vector<8x30xf32>
    %cst_29 = arith.constant 0.000000e+00 : f32
    %70 = vector.broadcast %cst_29 : f32 to vector<16x8xf32>
    %cst_30 = arith.constant 0.000000e+00 : f32
    %71 = vector.broadcast %cst_30 : f32 to vector<16x1xf32>
    %72 = tpu.concatenate %70, %67, %71 in 1 : vector<16x8xf32>, vector<16x21xf32>, vector<16x1xf32> -> vector<16x30xf32>
    %cst_31 = arith.constant 0.000000e+00 : f32
    %73 = vector.broadcast %cst_31 : f32 to vector<4x29xf32>
    %74 = tpu.concatenate %73, %3 in 1 : vector<4x29xf32>, vector<4x1xf32> -> vector<4x30xf32>
    %75 = tpu.concatenate %69, %72, %74 in 0 : vector<8x30xf32>, vector<16x30xf32>, vector<4x30xf32> -> vector<28x30xf32>
    %cst_32 = arith.constant dense<0.000000e+00> : vector<28x32xf32>
    %76 = tpu.matmul %75, %6, %cst_32 {dimension_numbers = #tpu.dot_dimension_numbers<[1], [0], [0], [1], [0, 0, 1, 1], [], []>, precision = #tpu.contract_precision<fp32>} : vector<28x30xf32>, vector<30x32xf32>, vector<28x32xf32> -> vector<28x32xf32>
    %77 = arith.addf %76, %10 : vector<28x32xf32>
    %78 = tpu.iota {dimensions = array<i32: 0>} : vector<28x32xi32>
    %c8_i32 = arith.constant 8 : i32
    %79 = vector.broadcast %c8_i32 : i32 to vector<28x32xi32>
    %80 = arith.cmpi sge, %78, %79 : vector<28x32xi32>
    %c24_i32 = arith.constant 24 : i32
    %81 = vector.broadcast %c24_i32 : i32 to vector<28x32xi32>
    %82 = arith.cmpi slt, %78, %81 : vector<28x32xi32>
    %83 = arith.andi %80, %82 : vector<28x32xi1>
    %cst_33 = arith.constant 1.000000e-01 : f32
    %84 = vector.broadcast %cst_33 : f32 to vector<28x32xf32>
    %85 = arith.mulf %84, %77 : vector<28x32xf32>
    %86 = arith.maximumf %77, %85 : vector<28x32xf32>
    %87 = arith.select %83, %86, %77 : vector<28x32xi1>, vector<28x32xf32>
    %c0_34 = arith.constant 0 : index
    %c0_35 = arith.constant 0 : index
    %88 = vector.load %arg3[%c0_34, %c0_35] : memref<28x32xf32, #tpu.memory_space<vmem>>, vector<28x32xf32>
    tpu.vector_store %arg3[%c0_34, %c0_35], %87 {strides = array<i32>} : memref<28x32xf32, #tpu.memory_space<vmem>>, vector<28x32xf32>,
    return
  }
}

</mosaic_0001>

<bundles_post_ra>
// kernel: tpu_custom_call.1
= control target key start
LH: loop header
LB: loop body
LE: loop exit
PB: predicated region body
PF: predicated region fallthrough
CT: control target
= control target key end

     0   :  { %vm34_vm0 = vcmask 130048   ;;  %s4467_s0 = inlined_call_operand.vmem [shape: f32[36,21], index: 0, kind: input, shape index: {}]   ;;  %s4468_s1 = inlined_call_operand.vmem [shape: f32[82,32], index: 1, kind: input, shape index: {}]   ;;  %s4469_s2 = inlined_call_operand.vmem [shape: f32[2,231,21], index: 2, kind: input, shape index: {}]   ;;  %s4470_s3 = inlined_call_operand.hbm [shape: f32[28,32], index: 3, kind: output, shape index: {}]  }
   0x1   :  { %v21_v0 = vld [vmem:[%s4468_s1 + $0x8] sm:$0xff]  ;;  %v20_v1 = vld [vmem:[%s4468_s1] sm:$0xff] }
   0x2   :  { %v16_v2 = vld [vmem:[%s4467_s0 + $0x8] sm:$0xff]  ;;  %v52_v3 = vand.u32 4294901760, %v21_v0  ;;  %v54_v4 = vand.u32 4294901760, %v20_v1 }
   0x3   :  { %v36_v5 = vsel %vm34_vm0, %v16_v2, 0 }
   0x4   :  { %v56_v6 = vand.u32 4294901760, %v36_v5 }
   0x5   :  { %8 = vsyncpa [#allocation3], 0  ;;  %v80_v7 = vsub.f32 %v21_v0, %v52_v3  ;;  %53 = vmatpush.msra.mxu0 %v52_v3  ;;  %v86_v8 = vsub.f32 %v20_v1, %v54_v4  ;;  %137 = vmatpush.msra.mxu3 %v52_v3  ;;  %v15_v19 = vld [vmem:[%s4467_s0] sm:$0xff]  ;;  %vm4483_vm1 = vcmask 64512   ;;  %v22_v42 = vld [vmem:[%s4468_s1 + $0x10] sm:$0xf] }
   0x6   :  { %v57_v9 = vsub.f32 %v36_v5, %v56_v6  ;;  %v200_v20 = vsel %vm4483_vm1, %v15_v19, 0  ;;  %vm353_vm2 = vcmask 1043456   ;;  %v2844_v49 = vld [vmem:[%s4468_s1 + $0x32] ss:$0 sm:$0xff]  ;;  %v18_v55 = vld [vmem:[%s4467_s0 + $0x18] sm:$0xff]  ;;  %vm653_vm3 = vcmask 1044480  }
   0x7   :  { %112 = vmatpush.msra.mxu2 %v80_v7  ;;  %55 = vmatpush.msra.mxu0 %v54_v4  ;;  %v81_v10 = vand.u32 4294901760, %v80_v7  ;;  %v87_v11 = vand.u32 4294901760, %v86_v8  ;;  %v2921_v21 = vand.u32 4294901760, %v200_v20  ;;  %v355_v43 = vsel %vm353_vm2, %v22_v42, 0  ;;  %v17_v54 = vld [vmem:[%s4467_s0 + $0x10] sm:$0xff]  ;;  %s2873_s28 = smov 21  }
   0x8   :  { %139 = vmatpush.msra.mxu3 %v54_v4  ;;  %v58_v12 = vand.u32 4294901760, %v57_v9  ;;  %v372_v44 = vand.u32 4294901760, %v355_v43  ;;  %v654_v57 = vrot.slane %v17_v54, 3  ;;  %v655_v58 = vrot.slane %v18_v55, 3  ;;  %s2874_s29 = smov 63   ;;  %s2875_s30 = smov 105  }
   0x9   :  { %115 = vmatpush.msra.mxu2 %v86_v8  ;;  %v82_v13 = vsub.f32 %v80_v7, %v81_v10  ;;  %v88_v14 = vsub.f32 %v86_v8, %v87_v11  ;;  %164 = vmatpush.msrb.mxu0 %v81_v10  ;;  %v2924_v23 = vsub.f32 %v200_v20, %v2921_v21  ;;  %vm664_vm4 = vcmask 1046528   ;;  %s2876_s4 = smov 42   ;;  %s2877_s5 = smov 84  }
   0xa   :  { %118 = vmatmul.f32.vlgmr.msra.gmra.mxu2 %v57_v9  ;;  %v59_v15 = vsub.f32 %v57_v9, %v58_v12  ;;  %143 = vmatmul.f32.vlgmr.msra.gmra.mxu3 %v58_v12  ;;  %v399_v45 = vsub.f32 %v355_v43, %v372_v44  ;;  %v2953_v61 = vsel %vm653_vm3, %v654_v57, %v655_v58  ;;  %v2956_v62 = vsel %vm653_vm3, 0.0, %v654_v57  ;;  %s2878_s6 = smov 126   ;;  %s2879_s7 = smov 19  }
   0xb   :  { %v83_v16 = vand.u32 4294901760, %v82_v13  ;;  %v89_v17 = vand.u32 4294901760, %v88_v14  ;;  %168 = vmatpush.msrb.mxu0 %v87_v11  ;;  %v2927_v28 = vand.u32 4294901760, %v2924_v23  ;;  %v665_v0 = vrot.slane %v2956_v62, 1  ;;  %s2880_s8 = smov 40   ;;  %s2881_s9 = smov 61  }
   0xc   :  { %v60_v18 = vand.u32 4294901760, %v59_v15  ;;  %v400_v46 = vand.u32 4294901760, %v399_v45  ;;  %v666_v1 = vrot.slane %v2953_v61, 1  ;;  %v688_v2 = vrot.slane %v2956_v62, 3  ;;  %s2882_s10 = smov 82   ;;  %s2780_s20 = sshll.u32 %s4470_s3, 4  ;;  %s2781_s20 = int_to_ptr.hbm [resolvable:$true] %s2780_s20 }
   0xd   :  { %84 = vmatpush.msra.mxu1 %v83_v16  ;;  %v222_v32 = vsub.f32 %v2924_v23, %v2927_v28  ;;  %v677_v9 = vrot.slane %v2956_v62, 2  ;;  %v678_v10 = vrot.slane %v2953_v61, 2  ;;  %v699_v11 = vrot.slane %v2956_v62, 4  ;;  %s2886_s21 = smov [#allocation2]   ;;  %s2887_s23 = smov 128  }
   0xe   :  { %61 = vmatmul.f32.vlgmr.msra.gmra.mxu0 %v60_v18  ;;  %v401_v47 = vsub.f32 %v399_v45, %v400_v46  ;;  %v667_v5 = vsel %vm664_vm4, %v665_v0, %v666_v1  ;;  %v700_v12 = vrot.slane %v2953_v61, 4  ;;  %vm676_vm5 = vcmask 1045504   ;;  %s2778_s22 = sshll.u32 %s2886_s21, 4  ;;  %s2779_s22 = int_to_ptr.vmem [resolvable:$true] %s2778_s22 }
   0xf   :  { %90 = vmatpush.msra.mxu1 %v89_v17  ;;  %v2931_v36 = vand.u32 4294901760, %v222_v32  ;;  %670 = vrot.lane.b32.xlu0 %v667_v5, %s2873_s28  ;;  %vm710_vm6 = vcmask 1042432   ;;  %v711_v14 = vrot.slane %v2956_v62, 5  ;;  %vm349_vm7 = vcmask 31744  }
  0x10   :  { %92 = vmatmul.f32.vlgmr.msra.gmra.mxu1 %v56_v6  ;;  %v402_v48 = vand.u32 4294901760, %v401_v47  ;;  %v712_v15 = vrot.slane %v2953_v61, 5  ;;  %v679_v17 = vsel %vm676_vm5, %v677_v9, %v678_v10  ;;  %v701_v18 = vsel %vm353_vm2, %v699_v11, %v700_v12 }
  0x11   :  { %189 = vmatpush.msrb.mxu1 %v52_v3  ;;  %v689_v3 = vrot.slane %v2953_v61, 3  ;;  %vm722_vm8 = vcmask 1041408   ;;  %vm734_vm9 = vcmask 1040384   ;;  %vm769_vm10 = vcmask 171008  }
  0x12   :  { %v713_v19 = vsel %vm710_vm6, %v711_v14, %v712_v15  ;;  %vm772_vm11 = vcmask 343040   ;;  %vm775_vm12 = vcmask 515072   ;;  %vm778_vm13 = vcmask 687104  }
  0x13   :  { %191 = vmatpush.msrb.mxu1 %v54_v4  ;;  %716 = vrot.lane.b32.xlu2 %v713_v19, %s2875_s30  ;;  %vm4489_vm14 = vcmask 859136   ;;  %vm4485_vm15 = vcmask 1031168   ;;  %vm787_vm0 = vcmask 154624   ;;  %vm793_vm1 = vcmask 498688  }
  0x16   :  { %170 = vmatmul.f32.vlgmr.msrb.gmra.mxu0 %v56_v6 }
  0x17   :  { %682 = vrot.lane.b32.xlu0 %v679_v17, %s2876_s4 }
  0x18   :  { %193 = vmatmul.f32.vlgmr.msrb.gmra.mxu1 %v56_v6  ;;  %v690_v6 = vsel %vm653_vm3, %v688_v2, %v689_v3 }
  0x19   :  { %693 = vrot.lane.b32.xlu1 %v690_v6, %s2874_s29 }
  0x21   :  { %704 = vrot.lane.b32.xlu1 %v701_v18, %s2877_s5 }
  0x81   :  { %v671_v0 = vpop.permute.xlu0 %670 }
  0x8b   :  { %v62_v22 = vpop.f32.mrf.mxu0  ;;  %v3029_v57 = vpop.permute.xlu1 %693 }
  0x8d   :  { %v93_v24 = vpop.f32.mrf.mxu1  ;;  %v119_v25 = vpop.f32.mrf.mxu2 }
  0x8e   :  { %v94_v26 = vadd.f32 %v93_v24, %v62_v22  ;;  %v144_v27 = vpop.f32.mrf.mxu3  ;;  %v2976_v22 = vsel %vm653_vm3, %v655_v58, 0.0  ;;  %v813_v58 = vld [vmem:[%s4469_s2 + $0x70] sm:$0xff] }
  0x90   :  { %v120_v29 = vadd.f32 %v119_v25, %v94_v26  ;;  %v723_v25 = vrot.slane %v2956_v62, 6 }
  0x92   :  { %v145_v30 = vadd.f32 %v144_v27, %v120_v29  ;;  %v668_v27 = vrot.slane %v2976_v22, 1  ;;  %v680_v29 = vrot.slane %v2976_v22, 2 }
  0x93   :  { %v171_v31 = vpop.f32.mrf.mxu0 }
  0x94   :  { %v172_v33 = vadd.f32 %v171_v31, %v145_v30  ;;  %v724_v30 = vrot.slane %v2953_v61, 6 }
  0x95   :  { %v194_v34 = vpop.f32.mrf.mxu1 }
  0x96   :  { %v195_v35 = vadd.f32 %v194_v34, %v172_v33  ;;  %v725_v32 = vsel %vm722_vm8, %v723_v25, %v724_v30  ;;  %v669_v34 = vsel %vm664_vm4, %v666_v1, %v668_v27  ;;  %v811_v1 = vld [vmem:[%s4469_s2 + $0x60] sm:$0xff] }
  0x97   :  { %728 = vrot.lane.b32.xlu2 %v725_v32, %s2878_s6  ;;  %672 = vrot.lane.b32.xlu0 %v669_v34, %s2873_s28  ;;  %v3052_v9 = vand.u32 4294901760, %v811_v1 }
  0x98   :  { %v217_v37 = vand.u32 4294901760, %v195_v35 }
  0x9a   :  { %v244_v38 = vsub.f32 %v195_v35, %v217_v37  ;;  %218 = vmatpush.msrb.mxu2 %v217_v37  ;;  %294 = vmatpush.msra.mxu1 %v217_v37  ;;  %v681_v35 = vsel %vm676_vm5, %v678_v10, %v680_v29  ;;  %v810_v10 = vld [vmem:[%s4469_s2 + $0x58] sm:$0xff] }
  0x9b   :  { %224 = vmatmul.f32.vlgmr.msrb.gmra.mxu2 %v2931_v36  ;;  %298 = vmatmul.f32.vlgmr.msra.gmra.mxu1 %v2927_v28  ;;  %v3068_v17 = vand.u32 4294901760, %v810_v10 }
  0x9c   :  { %v245_v39 = vand.u32 4294901760, %v244_v38  ;;  %271 = vmatpush.msra.mxu0 %v244_v38  ;;  %403 = vmatpush.msrb.mxu1 %v402_v48 }
  0x9d   :  { %274 = vmatmul.f32.vlgmr.msra.gmra.mxu0 %v2924_v23  ;;  %684 = vrot.lane.b32.xlu1 %v681_v35, %s2876_s4  ;;  %v3087_v32 = vsub.f32 %v810_v10, %v3068_v17 }
  0x9e   :  { %320 = vmatpush.msra.mxu2 %v245_v39  ;;  %v246_v40 = vsub.f32 %v244_v38, %v245_v39  ;;  %373 = vmatpush.msrb.mxu0 %v372_v44  ;;  %v691_v38 = vrot.slane %v2976_v22, 3  ;;  %v702_v39 = vrot.slane %v2976_v22, 4 }
  0x9f   :  { %497 = vmatpush.msra.mxu1 %v372_v44 }
  0xa0   :  { %v247_v41 = vand.u32 4294901760, %v246_v40  ;;  %426 = vmatpush.msrb.mxu2 %v399_v45  ;;  %475 = vmatpush.msra.mxu0 %v400_v46  ;;  %v735_v40 = vrot.slane %v2956_v62, 7  ;;  %v692_v42 = vsel %vm653_vm3, %v689_v3, %v691_v38  ;;  %v703_v43 = vsel %vm353_vm2, %v700_v12, %v702_v39  ;;  %v3057_v12 = vpop.permute.xlu2 %716 }
  0xa1   :  { %695 = vrot.lane.b32.xlu2 %v692_v42, %s2874_s29  ;;  %v714_v45 = vrot.slane %v2976_v22, 5  ;;  %706 = vrot.lane.b32.xlu0 %v703_v43, %s2877_s5  ;;  %v726_v46 = vrot.slane %v2976_v22, 6  ;;  %v806_v42 = vld [vmem:[%s4469_s2 + $0x38] sm:$0xff] }
  0xa2   :  { %248 = vmatpush.msrb.mxu3 %v247_v41  ;;  %v736_v41 = vrot.slane %v2953_v61, 7 }
  0xa3   :  { %250 = vmatmul.f32.vlgmr.msrb.gmra.mxu3 %v2921_v21  ;;  %322 = vmatmul.f32.vlgmr.msra.gmra.mxu2 %v2921_v21  ;;  %v715_v47 = vsel %vm710_vm6, %v712_v15, %v714_v45  ;;  %v727_v48 = vsel %vm722_vm8, %v724_v30, %v726_v46  ;;  %v809_v15 = vld [vmem:[%s4469_s2 + $0x50] sm:$0xff]  ;;  %v807_v30 = vld [vmem:[%s4469_s2 + $0x40] sm:$0xff]  ;;  %v770_v46 = vsel %vm769_vm10, %v2956_v62, %v671_v0 }
  0xa4   :  { %342 = vmatpush.msra.mxu3 %v217_v37  ;;  %v3077_v25 = vand.u32 4294901760, %v809_v15  ;;  %v805_v45 = vld [vmem:[%s4469_s2 + $0x30] sm:$0xff] }
  0xa5   :  { %v3131_v0 = vand.u32 4294901760, %v805_v45 }
  0xa6   :  { %449 = vmatpush.msrb.mxu3 %v372_v44  ;;  %v737_v44 = vsel %vm734_vm9, %v735_v40, %v736_v41  ;;  %v3096_v40 = vsub.f32 %v809_v15, %v3077_v25 }
  0xa7   :  { %740 = vrot.lane.b32.xlu1 %v737_v44, %s2879_s7 }
  0xa8   :  { %v4481_v62 = vand.u32 4294901760, %v3096_v40 }
  0xa9   :  { %718 = vrot.lane.b32.xlu2 %v715_v47, %s2875_s30  ;;  %746 = vrot.lane.b32.xlu0 %v2953_v61, %s2880_s8 }
  0xab   :  { %344 = vmatmul.f32.vlgmr.msra.gmra.mxu3 %v2921_v21 }
  0xaf   :  { %730 = vrot.lane.b32.xlu1 %v727_v48, %s2878_s6  ;;  %v4482_v48 = vand.u32 4294901760, %v3087_v32 }
  0xb1   :  { %755 = vrot.lane.b32.xlu2 %v669_v34, %s2881_s9  ;;  %763 = vrot.lane.b32.xlu0 %v681_v35, %s2882_s10  ;;  %v683_v35 = vpop.permute.xlu0 %682 }
  0xb9   :  { %748 = vrot.lane.b32.xlu2 %v2976_v22, %s2880_s8 }
 0x118   :  { %v299_v59 = vpop.f32.mrf.mxu1 }
 0x11a   :  { %v275_v53 = vpop.f32.mrf.mxu0 }
 0x11e   :  { %v225_v50 = vpop.f32.mrf.mxu2 }
 0x11f   :  { %v226_v51 = vadd.f32 %v2844_v49, %v225_v50  ;;  %v738_v49 = vrot.slane %v2976_v22, 7  ;;  %v808_v22 = vld [vmem:[%s4469_s2 + $0x48] sm:$0xff] }
 0x121   :  { %v739_v50 = vsel %vm734_vm9, %v736_v41, %v738_v49  ;;  %v3098_v41 = vand.u32 4294901760, %v807_v30 }
 0x122   :  { %742 = vrot.lane.b32.xlu1 %v739_v50, %s2879_s7 }
 0x126   :  { %v251_v52 = vpop.f32.mrf.mxu3  ;;  %v323_v63 = vpop.f32.mrf.mxu2 }
 0x127   :  { %v252_v56 = vadd.f32 %v251_v52, %v226_v51  ;;  %v2883_v51 = vmov 0.0  }
 0x128   :  { %v3014_v52 = vrot.slane %v2883_v51, 1 }
 0x129   :  { %v276_v60 = vadd.f32 %v275_v53, %v252_v56  ;;  %v3016_v53 = vrot.slane %v2883_v51, 2  ;;  %v814_v56 = vld [vmem:[%s4469_s2 + $0x78] sm:$0xff] }
 0x12a   :  { %v754_v54 = vsel %vm664_vm4, %v668_v27, %v3014_v52 }
 0x12b   :  { %v300_v4 = vadd.f32 %v299_v59, %v276_v60  ;;  %v762_v55 = vsel %vm676_vm5, %v680_v29, %v3016_v53  ;;  %757 = vrot.lane.b32.xlu0 %v754_v54, %s2881_s9  ;;  %v3034_v59 = vand.u32 4294901760, %v814_v56  ;;  %v812_v60 = vld [vmem:[%s4469_s2 + $0x68] sm:$0xff]  ;;  %v3120_v54 = vpop.permute.xlu2 %728 }
 0x12c   :  { %765 = vrot.lane.b32.xlu1 %v762_v55, %s2882_s10  ;;  %v3047_v5 = vand.u32 4294901760, %v812_v60  ;;  %v3122_v55 = vand.u32 4294901760, %v806_v42 }
 0x12d   :  { %v324_v7 = vadd.f32 %v323_v63, %v300_v4  ;;  %v3039_v63 = vand.u32 4294901760, %v813_v58  ;;  %v3045_v4 = vsub.f32 %v814_v56, %v3034_v59 }
 0x12e   :  { %v345_v8 = vpop.f32.mrf.mxu3  ;;  %v3061_v14 = vsub.f32 %v812_v60, %v3047_v5  ;;  %v3129_v60 = vsub.f32 %v807_v30, %v3098_v41  ;;  %v3148_v15 = vsub.f32 %v806_v42, %v3122_v55  ;;  %v673_v30 = vpop.permute.xlu0 %672 }
 0x12f   :  { %v346_v13 = vadd.f32 %v345_v8, %v324_v7  ;;  %v3050_v8 = vsub.f32 %v813_v58, %v3039_v63  ;;  %v771_v42 = vsel %vm769_vm10, %v2953_v61, %v673_v30  ;;  %v800_v61 = vld [vmem:[%s4469_s2 + $0x8] sm:$0xff] }
 0x130   :  { %v902_v29 = vand.u32 4294901760, %v3061_v14 }
 0x131   :  { %v348_v16 = vmax.f32 %v346_v13, 0.0  ;;  %v890_v13 = vand.u32 4294901760, %v3045_v4  ;;  %v896_v19 = vand.u32 4294901760, %v3050_v8 }
 0x132   :  { %v903_v44 = vsub.f32 %v3061_v14, %v902_v29 }
 0x133   :  { %v351_v20 = vsel %vm349_vm7, %v348_v16, 0  ;;  %v3066_v16 = vpop.permute.xlu1 %704  ;;  %v891_v27 = vsub.f32 %v3045_v4, %v890_v13  ;;  %vm790_vm7 = vcmask 326656  }
 0x134   :  { %v374_v24 = vand.u32 4294901760, %v351_v20 }
 0x135   :  { %v892_v43 = vand.u32 4294901760, %v891_v27  ;;  %v802_v27 = vld [vmem:[%s4469_s2 + $0x18] sm:$0xff] }
 0x136   :  { %v375_v26 = vsub.f32 %v351_v20, %v374_v24  ;;  %405 = vmatmul.f32.vlgmr.msrb.gmra.mxu1 %v374_v24  ;;  %v3072_v20 = vsub.f32 %v811_v1, %v3052_v9  ;;  %v804_v1 = vld [vmem:[%s4469_s2 + $0x28] sm:$0xff] }
 0x138   :  { %429 = vmatmul.f32.vlgmr.msrb.gmra.mxu2 %v375_v26  ;;  %v376_v31 = vand.u32 4294901760, %v375_v26  ;;  %v908_v38 = vand.u32 4294901760, %v3072_v20 }
 0x13a   :  { %453 = vmatmul.f32.vlgmr.msrb.gmra.mxu3 %v376_v31  ;;  %v377_v33 = vsub.f32 %v375_v26, %v376_v31  ;;  %v909_v51 = vsub.f32 %v3072_v20, %v908_v38 }
 0x13b   :  { %v685_v58 = vpop.permute.xlu1 %684 }
 0x13c   :  { %v378_v37 = vand.u32 4294901760, %v377_v33  ;;  %v3089_v33 = vand.u32 4294901760, %v808_v22 }
 0x13e   :  { %379 = vmatmul.f32.vlgmr.msrb.gmra.mxu0 %v378_v37  ;;  %499 = vmatmul.f32.vlgmr.msra.gmra.mxu1 %v374_v24  ;;  %v897_v37 = vsub.f32 %v3050_v8, %v896_v19  ;;  %v3115_v49 = vsub.f32 %v808_v22, %v3089_v33 }
 0x140   :  { %v898_v50 = vand.u32 4294901760, %v897_v37  ;;  %v4480_v10 = vand.u32 4294901760, %v3115_v49 }
 0x142   :  { %v927_v37 = vsub.f32 %v3115_v49, %v4480_v10 }
 0x146   :  { %477 = vmatmul.f32.vlgmr.msra.gmra.mxu0 %v374_v24 }
 0x1b3   :  { %v406_v2 = vpop.f32.mrf.mxu1 }
 0x1bb   :  { %v380_v3 = vpop.f32.mrf.mxu0  ;;  %v430_v7 = vpop.f32.mrf.mxu2 }
 0x1bc   :  { %v407_v6 = vadd.f32 %v406_v2, %v380_v3  ;;  %v500_v34 = vpop.f32.mrf.mxu1  ;;  %v904_v2 = vand.u32 4294901760, %v903_v44  ;;  %v773_v3 = vsel %vm772_vm11, %v770_v46, %v683_v35  ;;  %v3182_v44 = vand.u32 4294901760, %v802_v27 }
 0x1bd   :  { %v454_v18 = vpop.f32.mrf.mxu3 }
 0x1be   :  { %v431_v11 = vadd.f32 %v430_v7, %v407_v6  ;;  %v915_v7 = vsub.f32 %v3087_v32, %v4482_v48  ;;  %v821_v48 = vld [vmem:[%s4469_s2 + $0xb0] sm:$0xff] }
 0x1c0   :  { %v455_v24 = vadd.f32 %v454_v18, %v431_v11  ;;  %v803_v11 = vld [vmem:[%s4469_s2 + $0x20] sm:$0xff]  ;;  %v3150_v18 = vand.u32 4294901760, %v804_v1  ;;  %v916_v35 = vand.u32 4294901760, %v915_v7  ;;  %v3203_v7 = vpop.permute.xlu1 %740 }
 0x1c3   :  { %v478_v26 = vpop.f32.mrf.mxu0 }
 0x1c4   :  { %v479_v31 = vadd.f32 %v478_v26, %v455_v24  ;;  %v4479_v24 = vand.u32 4294901760, %v3129_v60  ;;  %v3158_v26 = vsub.f32 %v805_v45, %v3131_v0 }
 0x1c6   :  { %v501_v39 = vadd.f32 %v500_v34, %v479_v31  ;;  %v3164_v31 = vand.u32 4294901760, %v803_v11  ;;  %v776_v34 = vsel %vm775_vm12, %v773_v3, %v3029_v57  ;;  %v3180_v57 = vsub.f32 %v804_v1, %v3150_v18 }
 0x1c7   :  { %v933_v46 = vsub.f32 %v3129_v60, %v4479_v24  ;;  %v928_v3 = vand.u32 4294901760, %v927_v37 }
 0x1c8   :  { %v3111_v47 = vand.u32 4294901760, %v501_v39  ;;  %v3197_v1 = vsub.f32 %v803_v11, %v3164_v31 }
 0x1ca   :  { %v546_v56 = vsub.f32 %v501_v39, %v3111_v47  ;;  %520 = vmatpush.msra.mxu2 %v3111_v47  ;;  %596 = vmatpush.msrb.mxu1 %v3111_v47  ;;  %v801_v39 = vld [vmem:[%s4469_s2 + $0x10] sm:$0xff] }
 0x1cb   :  { %526 = vmatmul.f32.vlgmr.msra.gmra.mxu2 %v2931_v36  ;;  %600 = vmatmul.f32.vlgmr.msrb.gmra.mxu1 %v2927_v28  ;;  %v910_v36 = vand.u32 4294901760, %v909_v51  ;;  %v921_v28 = vsub.f32 %v3096_v40, %v4481_v62  ;;  %v779_v51 = vsel %vm778_vm13, %v776_v34, %v3066_v16  ;;  %v799_v16 = vld [vmem:[%s4469_s2] sm:$0xff]  ;;  %v4475_v34 = vand.u32 4294901760, %v3197_v1 }
 0x1cc   :  { %893 = vmatpush.msra.mxu1 %v892_v43  ;;  %573 = vmatpush.msrb.mxu0 %v546_v56  ;;  %v547_v6 = vand.u32 4294901760, %v546_v56  ;;  %v4478_v43 = vand.u32 4294901760, %v3148_v15 }
 0x1cd   :  { %576 = vmatmul.f32.vlgmr.msrb.gmra.mxu0 %v2924_v23  ;;  %v922_v45 = vand.u32 4294901760, %v921_v28  ;;  %v934_v28 = vand.u32 4294901760, %v933_v46 }
 0x1ce   :  { %840 = vmatpush.msra.mxu0 %v3034_v59  ;;  %899 = vmatpush.msra.mxu1 %v898_v50  ;;  %v548_v22 = vsub.f32 %v546_v56, %v547_v6  ;;  %v4477_v50 = vand.u32 4294901760, %v3158_v26  ;;  %v696_v56 = vpop.permute.xlu2 %695  ;;  %v939_v11 = vsub.f32 %v3148_v15, %v4478_v43 }
 0x1cf   :  { %622 = vmatpush.msrb.mxu2 %v547_v6  ;;  %v774_v6 = vsel %vm772_vm11, %v771_v42, %v685_v58  ;;  %v3217_v58 = vand.u32 4294901760, %v800_v61 }
 0x1d0   :  { %842 = vmatpush.msra.mxu0 %v3039_v63  ;;  %905 = vmatpush.msra.mxu1 %v904_v2  ;;  %v549_v23 = vand.u32 4294901760, %v548_v22  ;;  %v3199_v2 = vand.u32 4294901760, %v801_v39  ;;  %v782_v22 = vsel %vm4489_vm14, %v779_v51, %v3057_v12  ;;  %v945_v30 = vsub.f32 %v3158_v26, %v4477_v50 }
 0x1d1   :  { %995 = vmatpush.msra.mxu2 %v3045_v4  ;;  %v3232_v12 = vand.u32 4294901760, %v799_v16  ;;  %v940_v37 = vand.u32 4294901760, %v939_v11  ;;  %v785_v46 = vsel %vm4485_vm15, %v782_v22, %v3120_v54 }
 0x1d2   :  { %844 = vmatpush.msra.mxu0 %v3047_v5  ;;  %911 = vmatpush.msra.mxu1 %v910_v36  ;;  %v3215_v36 = vsub.f32 %v802_v27, %v3182_v44  ;;  %v777_v27 = vsel %vm775_vm12, %v774_v6, %v696_v56  ;;  %v946_v56 = vand.u32 4294901760, %v945_v30  ;;  %v3259_v11 = vand.u32 4294901760, %v785_v46 }
 0x1d3   :  { %998 = vmatpush.msra.mxu2 %v3050_v8  ;;  %550 = vmatpush.msra.mxu3 %v549_v23  ;;  %v3230_v23 = vsub.f32 %v801_v39, %v3199_v2  ;;  %v3242_v39 = vsub.f32 %v800_v61, %v3217_v58  ;;  %v3255_v6 = vsub.f32 %v799_v16, %v3232_v12 }
 0x1d4   :  { %552 = vmatmul.f32.vlgmr.msra.gmra.mxu3 %v2921_v21  ;;  %846 = vmatpush.msra.mxu0 %v3052_v9 }
 0x1d5   :  { %644 = vmatpush.msrb.mxu3 %v3111_v47  ;;  %917 = vmatpush.msra.mxu1 %v916_v35  ;;  %v4476_v47 = vand.u32 4294901760, %v3180_v57  ;;  %v707_v35 = vpop.permute.xlu0 %706  ;;  %v4472_v61 = vand.u32 4294901760, %v3230_v23 }
 0x1d6   :  { %1001 = vmatpush.msra.mxu2 %v3061_v14  ;;  %848 = vmatpush.msra.mxu0 %v3068_v17  ;;  %v780_v51 = vsel %vm778_vm13, %v777_v27, %v707_v35  ;;  %v4474_v27 = vand.u32 4294901760, %v3242_v39  ;;  %v3269_v35 = vpop.permute.xlu1 %730 }
 0x1d7   :  { %1053 = vmatpush.msra.mxu3 %v3034_v59  ;;  %923 = vmatpush.msra.mxu1 %v922_v45  ;;  %v951_v42 = vsub.f32 %v3180_v57, %v4476_v47  ;;  %v4471_v45 = vand.u32 4294901760, %v3215_v36 }
 0x1d8   :  { %1004 = vmatpush.msra.mxu2 %v3072_v20  ;;  %850 = vmatpush.msra.mxu0 %v3077_v25 }
 0x1d9   :  { %1055 = vmatpush.msra.mxu3 %v3039_v63  ;;  %929 = vmatpush.msra.mxu1 %v928_v3  ;;  %v957_v3 = vsub.f32 %v3197_v1, %v4475_v34  ;;  %v952_v22 = vand.u32 4294901760, %v951_v42  ;;  %v963_v30 = vsub.f32 %v3215_v36, %v4471_v45  ;;  %v4473_v42 = vand.u32 4294901760, %v3255_v6  ;;  %v827_v45 = vld [vmem:[%s4469_s2 + $0xe0] sm:$0x7f]  ;;  %v825_v34 = vld [vmem:[%s4469_s2 + $0xd0] sm:$0xff] }
 0x1da   :  { %1007 = vmatpush.msra.mxu2 %v3087_v32  ;;  %852 = vmatpush.msra.mxu0 %v3089_v33 }
 0x1db   :  { %1057 = vmatpush.msra.mxu3 %v3047_v5  ;;  %624 = vmatmul.f32.vlgmr.msrb.gmra.mxu2 %v2921_v21 }
 0x1dc   :  { %935 = vmatpush.msra.mxu1 %v934_v28  ;;  %1010 = vmatpush.msra.mxu2 %v3096_v40  ;;  %v719_v28 = vpop.permute.xlu2 %718 }
 0x1dd   :  { %1059 = vmatpush.msra.mxu3 %v3052_v9  ;;  %854 = vmatpush.msra.mxu0 %v3098_v41  ;;  %v783_v16 = vsel %vm4489_vm14, %v780_v51, %v719_v28  ;;  %v3282_v51 = vsub.f32 %v785_v46, %v3259_v11  ;;  %v747_v47 = vpop.permute.xlu0 %746  ;;  %vm829_vm14 = vcmask 842752  }
 0x1de   :  { %646 = vmatmul.f32.vlgmr.msrb.gmra.mxu3 %v2921_v21  ;;  %941 = vmatpush.msra.mxu1 %v940_v37  ;;  %v958_v21 = vand.u32 4294901760, %v957_v3  ;;  %v969_v37 = vsub.f32 %v3230_v23, %v4472_v61  ;;  %v975_v3 = vsub.f32 %v3242_v39, %v4474_v27  ;;  %v786_v28 = vsel %vm4485_vm15, %v783_v16, %v3269_v35  ;;  %v826_v16 = vld [vmem:[%s4469_s2 + $0xd8] sm:$0xff] }
 0x1df   :  { %1013 = vmatpush.msra.mxu2 %v3115_v49  ;;  %1061 = vmatpush.msra.mxu3 %v3068_v17  ;;  %v837_v61 = vsel %vm664_vm4, %v827_v45, 0  ;;  %v4487_v45 = vand.u32 4294901760, %v3282_v51  ;;  %v3311_v27 = vand.u32 4294901760, %v826_v16  ;;  %vm796_vm15 = vcmask 670720  }
 0x1e0   :  { %856 = vmatpush.msra.mxu0 %v3122_v55  ;;  %947 = vmatpush.msra.mxu1 %v946_v56  ;;  %v964_v56 = vand.u32 4294901760, %v963_v30  ;;  %v970_v46 = vand.u32 4294901760, %v969_v37  ;;  %v3299_v30 = vand.u32 4294901760, %v786_v28  ;;  %v3306_v37 = vand.u32 4294901760, %v837_v61 }
 0x1e1   :  { %1016 = vmatpush.msra.mxu2 %v3129_v60  ;;  %1063 = vmatpush.msra.mxu3 %v3077_v25  ;;  %v3337_v50 = vsub.f32 %v826_v16, %v3311_v27 }
 0x1e2   :  { %858 = vmatpush.msra.mxu0 %v3131_v0  ;;  %953 = vmatpush.msra.mxu1 %v952_v22  ;;  %v981_v22 = vsub.f32 %v3255_v6, %v4473_v42 }
 0x1e3   :  { %1019 = vmatpush.msra.mxu2 %v3148_v15  ;;  %1065 = vmatpush.msra.mxu3 %v3089_v33 }
 0x1e4   :  { %860 = vmatpush.msra.mxu0 %v3150_v18  ;;  %959 = vmatpush.msra.mxu1 %v958_v21  ;;  %v976_v21 = vand.u32 4294901760, %v975_v3  ;;  %v982_v42 = vand.u32 4294901760, %v981_v22  ;;  %v874_v3 = vsub.f32 %v3282_v51, %v4487_v45  ;;  %v824_v22 = vld [vmem:[%s4469_s2 + $0xc8] sm:$0xff]  ;;  %v756_v62 = vpop.permute.xlu2 %755 }
 0x1e5   :  { %1022 = vmatpush.msra.mxu2 %v3158_v26  ;;  %1067 = vmatpush.msra.mxu3 %v3098_v41  ;;  %v3345_v43 = vand.u32 4294901760, %v824_v22 }
 0x1e6   :  { %862 = vmatpush.msra.mxu0 %v3164_v31  ;;  %965 = vmatpush.msra.mxu1 %v964_v56  ;;  %v3319_v56 = vsub.f32 %v786_v28, %v3299_v30  ;;  %v3333_v28 = vand.u32 4294901760, %v825_v34  ;;  %v875_v16 = vand.u32 4294901760, %v874_v3 }
 0x1e7   :  { %1025 = vmatpush.msra.mxu2 %v3180_v57  ;;  %1069 = vmatpush.msra.mxu3 %v3122_v55 }
 0x1e8   :  { %864 = vmatpush.msra.mxu0 %v3182_v44  ;;  %971 = vmatpush.msra.mxu1 %v970_v46  ;;  %v3326_v46 = vsub.f32 %v837_v61, %v3306_v37  ;;  %v788_v61 = vsel %vm787_vm0, %v3120_v54, %v3203_v7  ;;  %v822_v7 = vld [vmem:[%s4469_s2 + $0xb8] sm:$0xff]  ;;  %v3359_v24 = vsub.f32 %v825_v34, %v3333_v28 }
 0x1e9   :  { %1028 = vmatpush.msra.mxu2 %v3197_v1  ;;  %1071 = vmatpush.msra.mxu3 %v3131_v0  ;;  %v791_v10 = vsel %vm790_vm7, %v788_v61, %v747_v47  ;;  %v3375_v34 = vand.u32 4294901760, %v822_v7  ;;  %v3378_v61 = vsub.f32 %v824_v22, %v3345_v43  ;;  %v820_v22 = vld [vmem:[%s4469_s2 + $0xa8] sm:$0xff] }
 0x1ea   :  { %866 = vmatpush.msra.mxu0 %v3199_v2  ;;  %977 = vmatpush.msra.mxu1 %v976_v21  ;;  %v4484_v21 = vand.u32 4294901760, %v3319_v56  ;;  %v4486_v54 = vand.u32 4294901760, %v3326_v46 }
 0x1eb   :  { %1031 = vmatpush.msra.mxu2 %v3215_v36  ;;  %1073 = vmatpush.msra.mxu3 %v3150_v18 }
 0x1ec   :  { %868 = vmatpush.msra.mxu0 %v3217_v58  ;;  %983 = vmatpush.msra.mxu1 %v982_v42  ;;  %v823_v42 = vld [vmem:[%s4469_s2 + $0xc0] sm:$0xff]  ;;  %v882_v47 = vsub.f32 %v3319_v56, %v4484_v21  ;;  %v1263_v4 = vsub.f32 %v3326_v46, %v4486_v54  ;;  %v794_v21 = vsel %vm793_vm1, %v791_v10, %v756_v62  ;;  %v743_v54 = vpop.permute.xlu1 %742  ;;  %v4491_v62 = vand.u32 4294901760, %v3378_v61 }
 0x1ed   :  { %1034 = vmatpush.msra.mxu2 %v3230_v23  ;;  %985 = vmatmul.f32.vlgmr.msra.gmra.mxu1 %v3259_v11  ;;  %v3364_v3 = vand.u32 4294901760, %v823_v42  ;;  %v819_v10 = vld [vmem:[%s4469_s2 + $0xa0] sm:$0xff] }
 0x1ee   :  { %1075 = vmatpush.msra.mxu3 %v3164_v31  ;;  %1171 = vmatpush.msrb.mxu1 %v3034_v59  ;;  %v4488_v59 = vand.u32 4294901760, %v3337_v50  ;;  %v883_v45 = vand.u32 4294901760, %v882_v47 }
 0x1ef   :  { %870 = vmatpush.msra.mxu0 %v3232_v12  ;;  %1037 = vmatpush.msra.mxu2 %v3242_v39 }
 0x1f0   :  { %876 = vmatmul.f32.vlgmr.msra.gmra.mxu0 %v875_v16  ;;  %1077 = vmatpush.msra.mxu3 %v3182_v44  ;;  %v3389_v16 = vand.u32 4294901760, %v821_v48  ;;  %v1269_v8 = vsub.f32 %v3337_v50, %v4488_v59  ;;  %v3415_v59 = vand.u32 4294901760, %v820_v22 }
 0x1f1   :  { %1100 = vmatpush.msrb.mxu0 %v890_v13  ;;  %1173 = vmatpush.msrb.mxu1 %v3039_v63  ;;  %v764_v13 = vpop.permute.xlu0 %763  ;;  %v4490_v63 = vand.u32 4294901760, %v3359_v24 }
 0x1f2   :  { %1040 = vmatpush.msra.mxu2 %v3255_v6  ;;  %1079 = vmatpush.msra.mxu3 %v3199_v2  ;;  %v797_v14 = vsel %vm796_vm15, %v794_v21, %v764_v13  ;;  %v789_v21 = vsel %vm787_vm0, %v3269_v35, %v743_v54  ;;  %v1270_v20 = vand.u32 4294901760, %v1269_v8  ;;  %v1281_v13 = vsub.f32 %v3378_v61, %v4491_v62  ;;  %v817_v35 = vld [vmem:[%s4469_s2 + $0x90] sm:$0xff] }
 0x1f3   :  { %1043 = vmatmul.f32.vlgmr.msra.gmra.mxu2 %v3282_v51  ;;  %1104 = vmatpush.msrb.mxu0 %v896_v19  ;;  %v3401_v19 = vsub.f32 %v823_v42, %v3364_v3  ;;  %v1264_v42 = vand.u32 4294901760, %v1263_v4  ;;  %v3435_v4 = vand.u32 4294901760, %v819_v10  ;;  %v831_v54 = vsel %vm829_vm14, %v797_v14, 0 }
 0x1f4   :  { %1175 = vmatpush.msrb.mxu1 %v3047_v5  ;;  %1215 = vmatpush.msrb.mxu2 %v3306_v37  ;;  %v3408_v5 = vsub.f32 %v822_v7, %v3375_v34  ;;  %v3425_v7 = vsub.f32 %v821_v48, %v3389_v16  ;;  %v4493_v48 = vand.u32 4294901760, %v3282_v51  ;;  %v4494_v8 = vand.u32 4294901760, %v3087_v32  ;;  %v816_v32 = vld [vmem:[%s4469_s2 + $0x88] sm:$0xff] }
 0x1f5   :  { %1081 = vmatpush.msra.mxu3 %v3217_v58  ;;  %1108 = vmatpush.msrb.mxu0 %v902_v29  ;;  %v1275_v29 = vsub.f32 %v3359_v24, %v4490_v63  ;;  %v4492_v47 = vand.u32 4294901760, %v3401_v19  ;;  %v3452_v51 = vsub.f32 %v820_v22, %v3415_v59  ;;  %v3470_v14 = vand.u32 4294901760, %v831_v54 }
 0x1f6   :  { %1177 = vmatpush.msrb.mxu1 %v3052_v9  ;;  %1217 = vmatpush.msrb.mxu2 %v3311_v27  ;;  %v818_v9 = vld [vmem:[%s4469_s2 + $0x98] sm:$0xff] }
 0x1f7   :  { %1083 = vmatpush.msra.mxu3 %v3232_v12  ;;  %1112 = vmatpush.msrb.mxu0 %v908_v38  ;;  %v749_v38 = vpop.permute.xlu2 %748  ;;  %v3449_v63 = vand.u32 4294901760, %v818_v9  ;;  %v1287_v22 = vsub.f32 %v3401_v19, %v4492_v47  ;;  %v766_v47 = vpop.permute.xlu1 %765 }
 0x1f8   :  { %1179 = vmatpush.msrb.mxu1 %v3068_v17  ;;  %1219 = vmatpush.msrb.mxu2 %v3333_v28 }
 0x1f9   :  { %1087 = vmatmul.f32.vlgmr.msra.gmra.mxu3 %v4493_v48  ;;  %884 = vmatmul.f32.gmra.mxu0 %v883_v45  ;;  %v1276_v45 = vand.u32 4294901760, %v1275_v29  ;;  %v792_v48 = vsel %vm790_vm7, %v789_v21, %v749_v38  ;;  %v758_v62 = vpop.permute.xlu0 %757  ;;  %v4495_v29 = vand.u32 4294901760, %v3096_v40  ;;  %v1282_v21 = vand.u32 4294901760, %v1281_v13 }
 0x1fa   :  { %1265 = vmatpush.msrb.mxu3 %v1264_v42  ;;  %1116 = vmatpush.msrb.mxu0 %v4494_v8  ;;  %v3468_v42 = vsub.f32 %v819_v10, %v3435_v4  ;;  %v815_v8 = vld [vmem:[%s4469_s2 + $0x80] sm:$0xff]  ;;  %v795_v10 = vsel %vm793_vm1, %v792_v48, %v758_v62  ;;  %v3485_v40 = vand.u32 4294901760, %v816_v32  ;;  %v3488_v13 = vsub.f32 %v818_v9, %v3449_v63 }
 0x1fb   :  { %1181 = vmatpush.msrb.mxu1 %v3077_v25  ;;  %1221 = vmatpush.msrb.mxu2 %v3345_v43  ;;  %v3465_v25 = vand.u32 4294901760, %v817_v35  ;;  %v1288_v62 = vand.u32 4294901760, %v1287_v22  ;;  %v3498_v17 = vand.u32 4294901760, %v815_v8  ;;  %v4500_v22 = vand.u32 4294901760, %v3452_v51 }
 0x1fc   :  { %1271 = vmatpush.msrb.mxu3 %v1270_v20  ;;  %989 = vmatmul.f32.gmra.mxu1 %v3299_v30  ;;  %v4496_v20 = vand.u32 4294901760, %v3408_v5  ;;  %v1310_v48 = vand.u32 4294901760, %v3468_v42 }
 0x1fd   :  { %1048 = vmatmul.f32.gmra.mxu2 %v3319_v56  ;;  %1120 = vmatpush.msrb.mxu0 %v4495_v29  ;;  %v4497_v29 = vand.u32 4294901760, %v3115_v49  ;;  %v3501_v9 = vsub.f32 %v817_v35, %v3465_v25  ;;  %v4499_v49 = vand.u32 4294901760, %v3129_v60  ;;  %v1316_v35 = vand.u32 4294901760, %v3488_v13 }
 0x1fe   :  { %v1293_v38 = vsub.f32 %v3408_v5, %v4496_v20  ;;  %1183 = vmatpush.msrb.mxu1 %v3089_v33  ;;  %1223 = vmatpush.msrb.mxu2 %v3364_v3  ;;  %v4498_v20 = vand.u32 4294901760, %v3425_v7  ;;  %v4502_v60 = vand.u32 4294901760, %v3148_v15  ;;  %v4503_v15 = vand.u32 4294901760, %v3158_v26 }
 0x1ff   :  { %1277 = vmatpush.msrb.mxu3 %v1276_v45  ;;  %1124 = vmatpush.msrb.mxu0 %v4497_v29  ;;  %v3504_v45 = vsub.f32 %v831_v54, %v3470_v14  ;;  %v798_v29 = vsel %vm796_vm15, %v795_v10, %v766_v47  ;;  %v3516_v54 = vsub.f32 %v816_v32, %v3485_v40  ;;  %v1322_v10 = vand.u32 4294901760, %v3501_v9 }
 0x200   :  { %v1299_v33 = vsub.f32 %v3425_v7, %v4498_v20  ;;  %1185 = vmatpush.msrb.mxu1 %v3098_v41  ;;  %1225 = vmatpush.msrb.mxu2 %v3375_v34  ;;  %v1294_v41 = vand.u32 4294901760, %v1293_v38  ;;  %v1305_v20 = vsub.f32 %v3452_v51, %v4500_v22  ;;  %v1311_v38 = vsub.f32 %v3468_v42, %v1310_v48 }
 0x201   :  { %1283 = vmatpush.msrb.mxu3 %v1282_v21  ;;  %1128 = vmatpush.msrb.mxu0 %v4499_v49  ;;  %v4501_v21 = vand.u32 4294901760, %v3319_v56  ;;  %v3529_v32 = vsub.f32 %v815_v8, %v3498_v17  ;;  %v1242_v56 = vand.u32 4294901760, %v3504_v45  ;;  %v4504_v8 = vand.u32 4294901760, %v3180_v57 }
 0x202   :  { %1187 = vmatpush.msrb.mxu1 %v3122_v55  ;;  %1227 = vmatpush.msrb.mxu2 %v3389_v16  ;;  %v1300_v47 = vand.u32 4294901760, %v1299_v33  ;;  %v834_v55 = vsel %vm829_vm14, %v798_v29, 0  ;;  %v1317_v33 = vsub.f32 %v3488_v13, %v1316_v35  ;;  %v1312_v26 = vand.u32 4294901760, %v1311_v38 }
 0x203   :  { %1093 = vmatmul.f32.gmra.mxu3 %v4501_v21  ;;  %1132 = vmatpush.msrb.mxu0 %v4502_v60  ;;  %v3540_v49 = vand.u32 4294901760, %v834_v55  ;;  %v1334_v29 = vand.u32 4294901760, %v3529_v32  ;;  %v4507_v60 = vand.u32 4294901760, %v3230_v23  ;;  %v4509_v23 = vand.u32 4294901760, %v3255_v6 }
 0x204   :  { %1289 = vmatpush.msrb.mxu3 %v1288_v62  ;;  %1189 = vmatpush.msrb.mxu1 %v3131_v0  ;;  %v1306_v0 = vand.u32 4294901760, %v1305_v20  ;;  %v1328_v62 = vand.u32 4294901760, %v3516_v54  ;;  %v1318_v57 = vand.u32 4294901760, %v1317_v33  ;;  %v4511_v6 = vand.u32 4294901760, %v3337_v50 }
 0x205   :  { %1229 = vmatpush.msrb.mxu2 %v3415_v59  ;;  %1136 = vmatpush.msrb.mxu0 %v4503_v15  ;;  %v3561_v20 = vsub.f32 %v834_v55, %v3540_v49  ;;  %v1335_v21 = vsub.f32 %v3529_v32, %v1334_v29 }
 0x206   :  { %1295 = vmatpush.msrb.mxu3 %v1294_v41  ;;  %1191 = vmatpush.msrb.mxu1 %v3150_v18  ;;  %v1323_v18 = vsub.f32 %v3501_v9, %v1322_v10  ;;  %v4505_v41 = vand.u32 4294901760, %v3197_v1  ;;  %v1329_v22 = vsub.f32 %v3516_v54, %v1328_v62  ;;  %v4506_v1 = vand.u32 4294901760, %v3215_v36 }
 0x207   :  { %1231 = vmatpush.msrb.mxu2 %v3435_v4  ;;  %1140 = vmatpush.msrb.mxu0 %v4504_v8  ;;  %v4508_v36 = vand.u32 4294901760, %v3242_v39  ;;  %v1336_v38 = vand.u32 4294901760, %v1335_v21 }
 0x208   :  { %1301 = vmatpush.msrb.mxu3 %v1300_v47  ;;  %1193 = vmatpush.msrb.mxu1 %v3164_v31  ;;  %v1243_v31 = vsub.f32 %v3504_v45, %v1242_v56  ;;  %v1330_v55 = vand.u32 4294901760, %v1329_v22 }
 0x209   :  { %1233 = vmatpush.msrb.mxu2 %v3449_v63  ;;  %1144 = vmatpush.msrb.mxu0 %v4505_v41 }
 0x20a   :  { %1307 = vmatpush.msrb.mxu3 %v1306_v0  ;;  %1195 = vmatpush.msrb.mxu1 %v3182_v44  ;;  %v1324_v44 = vand.u32 4294901760, %v1323_v18  ;;  %v1244_v47 = vand.u32 4294901760, %v1243_v31 }
 0x20b   :  { %1235 = vmatpush.msrb.mxu2 %v3465_v25  ;;  %1148 = vmatpush.msrb.mxu0 %v4506_v1 }
 0x20c   :  { %1313 = vmatpush.msrb.mxu3 %v1312_v26  ;;  %1197 = vmatpush.msrb.mxu1 %v3199_v2  ;;  %v1250_v2 = vand.u32 4294901760, %v3561_v20 }
 0x20d   :  { %1237 = vmatpush.msrb.mxu2 %v3485_v40  ;;  %1152 = vmatpush.msrb.mxu0 %v4507_v60 }
 0x20e   :  { %1319 = vmatpush.msrb.mxu3 %v1318_v57  ;;  %1199 = vmatpush.msrb.mxu1 %v3217_v58  ;;  %v1251_v58 = vsub.f32 %v3561_v20, %v1250_v2 }
 0x20f   :  { %1239 = vmatpush.msrb.mxu2 %v3498_v17  ;;  %1156 = vmatpush.msrb.mxu0 %v4508_v36 }
 0x210   :  { %1245 = vmatmul.f32.vlgmr.msrb.gmra.mxu2 %v1244_v47  ;;  %1325 = vmatpush.msrb.mxu3 %v1324_v44  ;;  %v1252_v39 = vand.u32 4294901760, %v1251_v58 }
 0x211   :  { %1352 = vmatpush.msra.mxu2 %v3326_v46  ;;  %1201 = vmatpush.msrb.mxu1 %v3232_v12  ;;  %v4510_v12 = vand.u32 4294901760, %v3326_v46 }
 0x212   :  { %1203 = vmatmul.f32.vlgmr.msrb.gmra.mxu1 %v3259_v11  ;;  %1331 = vmatpush.msrb.mxu3 %v1330_v55 }
 0x213   :  { %1355 = vmatpush.msra.mxu2 %v3337_v50  ;;  %1510 = vmatpush.msra.mxu1 %v3306_v37  ;;  %v4513_v50 = vand.u32 4294901760, %v3378_v61 }
 0x214   :  { %1160 = vmatpush.msrb.mxu0 %v4509_v23  ;;  %1337 = vmatpush.msrb.mxu3 %v1336_v38 }
 0x215   :  { %1162 = vmatmul.f32.vlgmr.msrb.gmra.mxu0 %v3259_v11  ;;  %1358 = vmatpush.msra.mxu2 %v3359_v24  ;;  %v4512_v11 = vand.u32 4294901760, %v3359_v24  ;;  %v4514_v24 = vand.u32 4294901760, %v3401_v19 }
 0x216   :  { %1448 = vmatpush.msra.mxu0 %v4510_v12  ;;  %1512 = vmatpush.msra.mxu1 %v3311_v27 }
 0x217   :  { %1339 = vmatmul.f32.vlgmr.msrb.gmra.mxu3 %v3470_v14  ;;  %1361 = vmatpush.msra.mxu2 %v3378_v61 }
 0x218   :  { %1404 = vmatpush.msra.mxu3 %v3306_v37  ;;  %1452 = vmatpush.msra.mxu0 %v4511_v6  ;;  %v2845_v37 = vld [vmem:[%s4468_s1 + $0x33] ss:$0 sm:$0xff] }
 0x219   :  { %1514 = vmatpush.msra.mxu1 %v3333_v28  ;;  %1253 = vmatmul.f32.gmra.mxu2 %v1252_v39 }
 0x21a   :  { %1406 = vmatpush.msra.mxu3 %v3311_v27  ;;  %1364 = vmatpush.msra.mxu2 %v3401_v19  ;;  %v4515_v27 = vand.u32 4294901760, %v3408_v5 }
 0x21b   :  { %1456 = vmatpush.msra.mxu0 %v4512_v11  ;;  %1516 = vmatpush.msra.mxu1 %v3345_v43 }
 0x21c   :  { %1408 = vmatpush.msra.mxu3 %v3333_v28  ;;  %1207 = vmatmul.f32.gmra.mxu1 %v3299_v30 }
 0x21d   :  { %1367 = vmatpush.msra.mxu2 %v3408_v5  ;;  %1460 = vmatpush.msra.mxu0 %v4513_v50 }
 0x21e   :  { %1518 = vmatpush.msra.mxu1 %v3364_v3  ;;  %1410 = vmatpush.msra.mxu3 %v3345_v43  ;;  %v4516_v43 = vand.u32 4294901760, %v3425_v7 }
 0x21f   :  { %1166 = vmatmul.f32.gmra.mxu0 %v3299_v30  ;;  %1370 = vmatpush.msra.mxu2 %v3425_v7  ;;  %v4517_v30 = vand.u32 4294901760, %v3452_v51 }
 0x220   :  { %1464 = vmatpush.msra.mxu0 %v4514_v24  ;;  %1520 = vmatpush.msra.mxu1 %v3375_v34 }
 0x221   :  { %1343 = vmatmul.f32.gmra.mxu3 %v3540_v49  ;;  %1373 = vmatpush.msra.mxu2 %v3452_v51 }
 0x222   :  { %1412 = vmatpush.msra.mxu3 %v3364_v3  ;;  %1468 = vmatpush.msra.mxu0 %v4515_v27 }
 0x223   :  { %1522 = vmatpush.msra.mxu1 %v3389_v16  ;;  %1376 = vmatpush.msra.mxu2 %v3468_v42 }
 0x224   :  { %1414 = vmatpush.msra.mxu3 %v3375_v34  ;;  %1472 = vmatpush.msra.mxu0 %v4516_v43 }
 0x225   :  { %1524 = vmatpush.msra.mxu1 %v3415_v59  ;;  %1379 = vmatpush.msra.mxu2 %v3488_v13 }
 0x226   :  { %1416 = vmatpush.msra.mxu3 %v3389_v16  ;;  %1476 = vmatpush.msra.mxu0 %v4517_v30 }
 0x227   :  { %1526 = vmatpush.msra.mxu1 %v3435_v4  ;;  %1382 = vmatpush.msra.mxu2 %v3501_v9 }
 0x228   :  { %1418 = vmatpush.msra.mxu3 %v3415_v59  ;;  %1480 = vmatpush.msra.mxu0 %v1310_v48 }
 0x229   :  { %1528 = vmatpush.msra.mxu1 %v3449_v63  ;;  %1385 = vmatpush.msra.mxu2 %v3516_v54 }
 0x22a   :  { %1420 = vmatpush.msra.mxu3 %v3435_v4  ;;  %1484 = vmatpush.msra.mxu0 %v1316_v35 }
 0x22b   :  { %1530 = vmatpush.msra.mxu1 %v3465_v25  ;;  %1388 = vmatpush.msra.mxu2 %v3529_v32 }
 0x22c   :  { %1422 = vmatpush.msra.mxu3 %v3449_v63  ;;  %1488 = vmatpush.msra.mxu0 %v1322_v10 }
 0x22d   :  { %1532 = vmatpush.msra.mxu1 %v3485_v40  ;;  %1391 = vmatmul.f32.vlgmr.msra.gmra.mxu2 %v3504_v45 }
 0x22e   :  { %1424 = vmatpush.msra.mxu3 %v3465_v25  ;;  %1492 = vmatpush.msra.mxu0 %v1328_v62 }
 0x22f   :  { %1534 = vmatpush.msra.mxu1 %v3498_v17 }
 0x230   :  { %1426 = vmatpush.msra.mxu3 %v3485_v40  ;;  %1536 = vmatmul.f32.vlgmr.msra.gmra.mxu1 %v3470_v14 }
 0x231   :  { %1496 = vmatpush.msra.mxu0 %v1334_v29 }
 0x232   :  { %1428 = vmatpush.msra.mxu3 %v3498_v17  ;;  %1498 = vmatmul.f32.vlgmr.msra.gmra.mxu0 %v3470_v14  ;;  %v29_v14 = vld [vmem:[%s4468_s1 + $0x34] sm:$0x3] }
 0x233   :  { %1432 = vmatmul.f32.vlgmr.msra.gmra.mxu3 %v1242_v56  ;;  %v828_v13 = vperm.slane %v29_v14, 0 }
 0x235   :  { %1396 = vmatmul.f32.gmra.mxu2 %v3561_v20 }
 0x238   :  { %1540 = vmatmul.f32.gmra.mxu1 %v3540_v49 }
 0x23a   :  { %1502 = vmatmul.f32.gmra.mxu0 %v3540_v49 }
 0x23b   :  { %1438 = vmatmul.f32.gmra.mxu3 %v1250_v2 }
 0x248   :  { %v601_v61 = vpop.f32.mrf.mxu1 }
 0x24a   :  { %v577_v3 = vpop.f32.mrf.mxu0 }
 0x24e   :  { %v527_v46 = vpop.f32.mrf.mxu2 }
 0x24f   :  { %v528_v28 = vadd.f32 %v2845_v37, %v527_v46 }
 0x257   :  { %v553_v59 = vpop.f32.mrf.mxu3 }
 0x258   :  { %v554_v34 = vadd.f32 %v553_v59, %v528_v28 }
 0x25a   :  { %v578_v63 = vadd.f32 %v577_v3, %v554_v34 }
 0x25c   :  { %v602_v16 = vadd.f32 %v601_v61, %v578_v63 }
 0x25e   :  { %v625_v19 = vpop.f32.mrf.mxu2 }
 0x25f   :  { %v626_v5 = vadd.f32 %v625_v19, %v602_v16 }
 0x261   :  { %v647_v7 = vpop.f32.mrf.mxu3 }
 0x262   :  { %v3668_v4 = vadd.f32 %v647_v7, %v626_v5 }
 0x26a   :  { %v986_v42 = vpop.f32.mrf.mxu1 }
 0x26d   :  { %v877_v51 = vpop.f32.mrf.mxu0 }
 0x26e   :  { %v878_v45 = vadd.f32 %v877_v51, %v828_v13 }
 0x270   :  { %v987_v10 = vadd.f32 %v986_v42, %v878_v45 }
 0x276   :  { %v1044_v17 = vpop.f32.mrf.mxu2  ;;  %v885_v48 = vpop.f32.mrf.mxu0 }
 0x277   :  { %v1045_v15 = vadd.f32 %v1044_v17, %v987_v10  ;;  %v886_v0 = vadd.f32 %v885_v48, %v828_v13 }
 0x279   :  { %v990_v35 = vpop.f32.mrf.mxu1 }
 0x27a   :  { %v991_v26 = vadd.f32 %v990_v35, %v886_v0 }
 0x27c   :  { %v1088_v25 = vpop.f32.mrf.mxu3 }
 0x27d   :  { %v1089_v33 = vadd.f32 %v1088_v25, %v1045_v15 }
 0x280   :  { %v1049_v40 = vpop.f32.mrf.mxu2 }
 0x281   :  { %v1050_v18 = vadd.f32 %v1049_v40, %v991_v26 }
 0x286   :  { %v1094_v9 = vpop.f32.mrf.mxu3 }
 0x287   :  { %v1095_v57 = vadd.f32 %v1094_v9, %v1050_v18 }
 0x28f   :  { %v1204_v62 = vpop.f32.mrf.mxu1 }
 0x292   :  { %v1163_v32 = vpop.f32.mrf.mxu0 }
 0x293   :  { %v1246_v54 = vpop.f32.mrf.mxu2  ;;  %v1164_v49 = vadd.f32 %v1163_v32, %v1089_v33 }
 0x295   :  { %v1205_v29 = vadd.f32 %v1204_v62, %v1164_v49 }
 0x297   :  { %v1247_v22 = vadd.f32 %v1246_v54, %v1205_v29  ;;  %v2807_v29 = vld [vmem:[%s4469_s2 + $0x160] sm:$0xff] }
 0x299   :  { %v1208_v1 = vpop.f32.mrf.mxu1 }
 0x29a   :  { %v1340_v56 = vpop.f32.mrf.mxu3 }
 0x29b   :  { %v1341_v21 = vadd.f32 %v1340_v56, %v1247_v22 }
 0x29c   :  { %v1254_v8 = vpop.f32.mrf.mxu2  ;;  %v1167_v41 = vpop.f32.mrf.mxu0 }
 0x29d   :  { %v1168_v20 = vadd.f32 %v1167_v41, %v1095_v57  ;;  %v2806_v41 = vld [vmem:[%s4469_s2 + $0x158] sm:$0xff]  ;;  %v2805_v57 = vld [vmem:[%s4469_s2 + $0x150] sm:$0xff] }
 0x29e   :  { %v3737_v22 = vand.u32 4294901760, %v2806_v41 }
 0x29f   :  { %v1209_v60 = vadd.f32 %v1208_v1, %v1168_v20  ;;  %v3739_v20 = vand.u32 4294901760, %v2805_v57  ;;  %v2804_v1 = vld [vmem:[%s4469_s2 + $0x148] sm:$0xff] }
 0x2a1   :  { %v1255_v2 = vadd.f32 %v1254_v8, %v1209_v60 }
 0x2a4   :  { %v1344_v31 = vpop.f32.mrf.mxu3 }
 0x2a5   :  { %v1345_v39 = vadd.f32 %v1344_v31, %v1255_v2  ;;  %v3735_v31 = vand.u32 4294901760, %v2807_v29 }
 0x2a7   :  { %1718 = vmatpush.msrb.mxu2 %v3735_v31  ;;  %1931 = vmatpush.msrb.mxu1 %v3735_v31 }
 0x2a9   :  { %1720 = vmatpush.msrb.mxu2 %v3737_v22  ;;  %1933 = vmatpush.msrb.mxu1 %v3737_v22 }
 0x2ab   :  { %1722 = vmatpush.msrb.mxu2 %v3739_v20  ;;  %1935 = vmatpush.msrb.mxu1 %v3739_v20 }
 0x2ad   :  { %v1537_v58 = vpop.f32.mrf.mxu1 }
 0x2af   :  { %v1499_v55 = vpop.f32.mrf.mxu0 }
 0x2b0   :  { %v1392_v44 = vpop.f32.mrf.mxu2 }
 0x2b1   :  { %v1393_v47 = vadd.f32 %v1392_v44, %v1341_v21  ;;  %v2803_v44 = vld [vmem:[%s4469_s2 + $0x140] sm:$0xff]  ;;  %v2802_v21 = vld [vmem:[%s4469_s2 + $0x138] sm:$0xff] }
 0x2b5   :  { %v1541_v46 = vpop.f32.mrf.mxu1 }
 0x2b6   :  { %v1433_v36 = vpop.f32.mrf.mxu3 }
 0x2b7   :  { %v1434_v38 = vadd.f32 %v1433_v36, %v1393_v47  ;;  %v1503_v30 = vpop.f32.mrf.mxu0  ;;  %v3751_v47 = vand.u32 4294901760, %v2804_v1  ;;  %v3755_v36 = vand.u32 4294901760, %v2802_v21 }
 0x2b8   :  { %v1397_v12 = vpop.f32.mrf.mxu2 }
 0x2b9   :  { %v1500_v23 = vadd.f32 %v1499_v55, %v1434_v38  ;;  %v1398_v50 = vadd.f32 %v1397_v12, %v1345_v39  ;;  %v3753_v55 = vand.u32 4294901760, %v2803_v44  ;;  %v3759_v38 = vsub.f32 %v2807_v29, %v3735_v31  ;;  %1724 = vmatpush.msrb.mxu2 %v3751_v47  ;;  %1937 = vmatpush.msrb.mxu1 %v3751_v47 }
 0x2ba   :  { %v3770_v12 = vsub.f32 %v2804_v1, %v3751_v47 }
 0x2bb   :  { %v1538_v6 = vadd.f32 %v1537_v58, %v1500_v23  ;;  %v3762_v58 = vsub.f32 %v2806_v41, %v3737_v22  ;;  %v3765_v23 = vsub.f32 %v2805_v57, %v3739_v20  ;;  %v3773_v39 = vsub.f32 %v2803_v44, %v3753_v55  ;;  %1873 = vmatpush.msrb.mxu0 %v3759_v38  ;;  %v2797_v41 = vld [vmem:[%s4469_s2 + $0x110] sm:$0xff] }
 0x2bc   :  { %1726 = vmatpush.msrb.mxu2 %v3753_v55  ;;  %1939 = vmatpush.msrb.mxu1 %v3753_v55 }
 0x2bd   :  { %v1544_v11 = vmul.f32 0.1, %v1538_v6  ;;  %1876 = vmatpush.msrb.mxu0 %v3762_v58 }
 0x2be   :  { %v1439_v24 = vpop.f32.mrf.mxu3  ;;  %1728 = vmatpush.msrb.mxu2 %v3755_v36  ;;  %1941 = vmatpush.msrb.mxu1 %v3755_v36 }
 0x2bf   :  { %v1440_v27 = vadd.f32 %v1439_v24, %v1398_v50  ;;  %v1546_v43 = vmax.f32 %v1538_v6, %v1544_v11  ;;  %v1768_v6 = vand.u32 4294901760, %v3759_v38  ;;  %v1774_v11 = vand.u32 4294901760, %v3762_v58  ;;  %1879 = vmatpush.msrb.mxu0 %v3765_v23 }
 0x2c0   :  { %v1780_v50 = vand.u32 4294901760, %v3765_v23 }
 0x2c1   :  { %v1504_v37 = vadd.f32 %v1503_v30, %v1440_v27  ;;  %v1550_v59 = vrot.slane %v1546_v43, 3  ;;  %v1786_v43 = vand.u32 4294901760, %v3770_v12  ;;  %v3784_v30 = vsub.f32 %v2802_v21, %v3755_v36  ;;  %1882 = vmatpush.msrb.mxu0 %v3770_v12 }
 0x2c3   :  { %v1542_v28 = vadd.f32 %v1541_v46, %v1504_v37  ;;  %v3674_v61 = vsel %vm653_vm3, 0.0, %v1550_v59  ;;  %v1769_v46 = vsub.f32 %v3759_v38, %v1768_v6  ;;  %1885 = vmatpush.msrb.mxu0 %v3773_v39  ;;  %v2820_v38 = vld [vmem:[%s4469_s2 + $0x1c8] sm:$0x7f] }
 0x2c4   :  { %v1582_v19 = vrot.slane %v3674_v61, 3  ;;  %v1571_v5 = vrot.slane %v3674_v61, 2  ;;  %v1560_v51 = vrot.slane %v3674_v61, 1  ;;  %v1615_v45 = vrot.slane %v3674_v61, 6 }
 0x2c5   :  { %v1545_v3 = vmul.f32 0.1, %v1542_v28  ;;  %v1604_v35 = vrot.slane %v3674_v61, 5  ;;  %v1593_v54 = vrot.slane %v3674_v61, 4  ;;  %1888 = vmatpush.msrb.mxu0 %v3784_v30 }
 0x2c7   :  { %v1547_v34 = vmax.f32 %v1542_v28, %v1545_v3  ;;  %v1775_v28 = vsub.f32 %v3762_v58, %v1774_v11  ;;  %v1792_v3 = vand.u32 4294901760, %v3773_v39  ;;  %v1715_v58 = vsel %vm664_vm4, %v2820_v38, 0 }
 0x2c9   :  { %v1551_v63 = vrot.slane %v1547_v34, 3  ;;  %v1770_v34 = vand.u32 4294901760, %v1769_v46 }
 0x2cb   :  { %v3677_v16 = vsel %vm653_vm3, %v1550_v59, %v1551_v63  ;;  %v3700_v15 = vsel %vm653_vm3, %v1551_v63, 0.0  ;;  %v1781_v59 = vsub.f32 %v3765_v23, %v1780_v50  ;;  %v1776_v63 = vand.u32 4294901760, %v1775_v28  ;;  %1771 = vmatpush.msrb.mxu3 %v1770_v34 }
 0x2cc   :  { %v1583_v7 = vrot.slane %v3677_v16, 3  ;;  %v1572_v17 = vrot.slane %v3677_v16, 2  ;;  %v1561_v25 = vrot.slane %v3677_v16, 1  ;;  %v1616_v13 = vrot.slane %v3677_v16, 6 }
 0x2cd   :  { %v1605_v48 = vrot.slane %v3677_v16, 5  ;;  %v1594_v9 = vrot.slane %v3677_v16, 4  ;;  %v1585_v0 = vrot.slane %v3700_v15, 3  ;;  %v1574_v33 = vrot.slane %v3700_v15, 2  ;;  %1777 = vmatpush.msrb.mxu3 %v1776_v63 }
 0x2ce   :  { %v1584_v42 = vsel %vm653_vm3, %v1582_v19, %v1583_v7  ;;  %v1573_v14 = vsel %vm676_vm5, %v1571_v5, %v1572_v17  ;;  %v1562_v40 = vsel %vm664_vm4, %v1560_v51, %v1561_v25  ;;  %v1617_v10 = vsel %vm722_vm8, %v1615_v45, %v1616_v13 }
 0x2cf   :  { %1587 = vrot.lane.b32.xlu1 %v1584_v42, %s2874_s29  ;;  %1576 = vrot.lane.b32.xlu0 %v1573_v14, %s2876_s4  ;;  %v1606_v32 = vsel %vm710_vm6, %v1604_v35, %v1605_v48  ;;  %v1595_v56 = vsel %vm353_vm2, %v1593_v54, %v1594_v9  ;;  %v1563_v62 = vrot.slane %v3700_v15, 1  ;;  %v1586_v49 = vsel %vm653_vm3, %v1583_v7, %v1585_v0 }
 0x2d0   :  { %1565 = vrot.lane.b32.xlu2 %v1562_v40, %s2873_s28  ;;  %v3713_v8 = vsel %vm676_vm5, %v1572_v17, %v1574_v33  ;;  %v1618_v18 = vrot.slane %v3700_v15, 6  ;;  %v1607_v60 = vrot.slane %v3700_v15, 5  ;;  %v1596_v2 = vrot.slane %v3700_v15, 4 }
 0x2d1   :  { %v3721_v26 = vsel %vm664_vm4, %v1561_v25, %v1563_v62  ;;  %v1787_v19 = vsub.f32 %v3770_v12, %v1786_v43  ;;  %v1798_v5 = vand.u32 4294901760, %v3784_v30  ;;  %v1627_v7 = vrot.slane %v3677_v16, 7 }
 0x2d2   :  { %v1619_v24 = vsel %vm722_vm8, %v1616_v13, %v1618_v18  ;;  %v1608_v27 = vsel %vm710_vm6, %v1605_v48, %v1607_v60  ;;  %v1597_v37 = vsel %vm353_vm2, %v1594_v9, %v1596_v2  ;;  %v1782_v17 = vand.u32 4294901760, %v1781_v59  ;;  %v2796_v2 = vld [vmem:[%s4469_s2 + $0x108] sm:$0xff]  ;;  %v2795_v59 = vld [vmem:[%s4469_s2 + $0x100] sm:$0xff] }
 0x2d3   :  { %v1793_v51 = vsub.f32 %v3773_v39, %v1792_v3  ;;  %v1626_v25 = vrot.slane %v3674_v61, 7  ;;  %v1788_v42 = vand.u32 4294901760, %v1787_v19  ;;  %v1799_v14 = vsub.f32 %v3784_v30, %v1798_v5 }
 0x2d4   :  { %1783 = vmatpush.msrb.mxu3 %v1782_v17  ;;  %v1629_v48 = vrot.slane %v3700_v15, 7  ;;  %v1650_v35 = vsel %vm676_vm5, %v1574_v33, %v3016_v53  ;;  %v1643_v54 = vsel %vm664_vm4, %v1563_v62, %v3014_v52  ;;  %v2799_v52 = vld [vmem:[%s4469_s2 + $0x120] sm:$0xff]  ;;  %v3903_v60 = vand.u32 4294901760, %v2797_v41  ;;  %v2794_v17 = vld [vmem:[%s4469_s2 + $0xf8] sm:$0xff] }
 0x2d5   :  { %v1628_v40 = vsel %vm734_vm9, %v1626_v25, %v1627_v7  ;;  %v1794_v13 = vand.u32 4294901760, %v1793_v51  ;;  %v1800_v9 = vand.u32 4294901760, %v1799_v14  ;;  %v3871_v62 = vand.u32 4294901760, %v2799_v52 }
 0x2d6   :  { %1789 = vmatpush.msrb.mxu3 %v1788_v42  ;;  %v1630_v45 = vsel %vm734_vm9, %v1627_v7, %v1629_v48  ;;  %v3913_v46 = vand.u32 4294901760, %v2796_v2  ;;  %v3916_v28 = vsub.f32 %v2797_v41, %v3903_v60  ;;  %v3929_v7 = vand.u32 4294901760, %v2795_v59 }
 0x2d7   :  { %1620 = vrot.lane.b32.xlu1 %v1617_v10, %s2878_s6  ;;  %1609 = vrot.lane.b32.xlu0 %v1606_v32, %s2875_s30  ;;  %v2801_v10 = vld [vmem:[%s4469_s2 + $0x130] sm:$0xff]  ;;  %v3884_v18 = vsub.f32 %v2799_v52, %v3871_v62  ;;  %v3936_v25 = vand.u32 4294901760, %v2794_v17  ;;  %v2792_v52 = vld [vmem:[%s4469_s2 + $0xe8] sm:$0xff]  ;;  %v4017_v23 = vand.u32 4294901760, %v1715_v58  ;;  %vm4518_vm2 = vcmask 859136  }
 0x2d8   :  { %1598 = vrot.lane.b32.xlu2 %v1595_v56, %s2877_s5  ;;  %1795 = vmatpush.msrb.mxu3 %v1794_v13  ;;  %v3852_v32 = vand.u32 4294901760, %v2801_v10  ;;  %v2800_v56 = vld [vmem:[%s4469_s2 + $0x128] sm:$0xff]  ;;  %v3927_v19 = vsub.f32 %v2796_v2, %v3913_v46  ;;  %v1828_v51 = vand.u32 4294901760, %v3916_v28  ;;  %vm4519_vm3 = vcmask 1031168   ;;  %vm4520_vm4 = vmmov %vm4518_vm2 }
 0x2d9   :  { %v3860_v0 = vand.u32 4294901760, %v2800_v56  ;;  %v1816_v44 = vand.u32 4294901760, %v3884_v18  ;;  %v3949_v48 = vsub.f32 %v2794_v17, %v3936_v25  ;;  %v4026_v12 = vsub.f32 %v1715_v58, %v4017_v23  ;;  %vm4521_vm6 = vmmov %vm4519_vm3 }
 0x2da   :  { %1801 = vmatpush.msrb.mxu3 %v1800_v9  ;;  %v3858_v53 = vsub.f32 %v2801_v10, %v3852_v32  ;;  %1730 = vmatpush.msrb.mxu2 %v3852_v32  ;;  %v1834_v14 = vand.u32 4294901760, %v3927_v19  ;;  %v1829_v13 = vsub.f32 %v3916_v28, %v1828_v51  ;;  %v2793_v9 = vld [vmem:[%s4469_s2 + $0xf0] sm:$0xff]  ;;  %vm2437_vm8 = vcmask 236544  }
 0x2db   :  { %1943 = vmatpush.msrb.mxu1 %v3852_v32  ;;  %v3869_v33 = vsub.f32 %v2800_v56, %v3860_v0  ;;  %v1846_v56 = vand.u32 4294901760, %v3949_v48  ;;  %v2140_v39 = vand.u32 4294901760, %v4026_v12 }
 0x2dc   :  { %1732 = vmatpush.msrb.mxu2 %v3860_v0  ;;  %1891 = vmatpush.msrb.mxu0 %v3858_v53  ;;  %v1830_v10 = vand.u32 4294901760, %v1829_v13 }
 0x2dd   :  { %1945 = vmatpush.msrb.mxu1 %v3860_v0 }
 0x2de   :  { %1734 = vmatpush.msrb.mxu2 %v3871_v62  ;;  %1894 = vmatpush.msrb.mxu0 %v3869_v33 }
 0x2df   :  { %1589 = vrot.lane.b32.xlu1 %v1586_v49, %s2874_s29  ;;  %1578 = vrot.lane.b32.xlu0 %v3713_v8, %s2876_s4  ;;  %v2798_v49 = vld [vmem:[%s4469_s2 + $0x118] sm:$0xff] }
 0x2e0   :  { %1567 = vrot.lane.b32.xlu2 %v3721_v26, %s2873_s28  ;;  %v3886_v29 = vand.u32 4294901760, %v2798_v49  ;;  %1947 = vmatpush.msrb.mxu1 %v3871_v62 }
 0x2e1   :  { %1897 = vmatpush.msrb.mxu0 %v3884_v18 }
 0x2e2   :  { %v3899_v21 = vsub.f32 %v2798_v49, %v3886_v29  ;;  %1736 = vmatpush.msrb.mxu2 %v3886_v29  ;;  %1949 = vmatpush.msrb.mxu1 %v3886_v29 }
 0x2e4   :  { %1738 = vmatpush.msrb.mxu2 %v3903_v60  ;;  %1951 = vmatpush.msrb.mxu1 %v3903_v60 }
 0x2e5   :  { %1900 = vmatpush.msrb.mxu0 %v3899_v21 }
 0x2e6   :  { %1740 = vmatpush.msrb.mxu2 %v3913_v46  ;;  %1953 = vmatpush.msrb.mxu1 %v3913_v46 }
 0x2e7   :  { %1622 = vrot.lane.b32.xlu1 %v1619_v24, %s2878_s6  ;;  %1611 = vrot.lane.b32.xlu0 %v1608_v27, %s2875_s30  ;;  %v1817_v27 = vsub.f32 %v3884_v18, %v1816_v44  ;;  %v2815_v18 = vld [vmem:[%s4469_s2 + $0x1a0] sm:$0xff] }
 0x2e8   :  { %1600 = vrot.lane.b32.xlu2 %v1597_v37, %s2877_s5  ;;  %v1822_v37 = vand.u32 4294901760, %v3899_v21  ;;  %1903 = vmatpush.msrb.mxu0 %v3916_v28  ;;  %v2814_v28 = vld [vmem:[%s4469_s2 + $0x198] sm:$0xff] }
 0x2e9   :  { %v1818_v34 = vand.u32 4294901760, %v1817_v27  ;;  %1742 = vmatpush.msrb.mxu2 %v3929_v7  ;;  %1955 = vmatpush.msrb.mxu1 %v3929_v7 }
 0x2ea   :  { %v1823_v63 = vsub.f32 %v3899_v21, %v1822_v37  ;;  %1906 = vmatpush.msrb.mxu0 %v3927_v19 }
 0x2eb   :  { %1744 = vmatpush.msrb.mxu2 %v3936_v25  ;;  %1957 = vmatpush.msrb.mxu1 %v3936_v25 }
 0x2ec   :  { %v1824_v42 = vand.u32 4294901760, %v1823_v63 }
 0x2ef   :  { %1637 = vrot.lane.b32.xlu0 %v3677_v16, %s2880_s8  ;;  %1644 = vrot.lane.b32.xlu1 %v3721_v26, %s2881_s9  ;;  %v1810_v26 = vand.u32 4294901760, %v3869_v33 }
 0x2f0   :  { %1631 = vrot.lane.b32.xlu2 %v1628_v40, %s2879_s7  ;;  %v3942_v40 = vsub.f32 %v2795_v59, %v3929_v7 }
 0x2f1   :  { %v1811_v1 = vsub.f32 %v3869_v33, %v1810_v26 }
 0x2f2   :  { %1909 = vmatpush.msrb.mxu0 %v3942_v40 }
 0x2f3   :  { %v1812_v24 = vand.u32 4294901760, %v1811_v1  ;;  %v1847_v1 = vsub.f32 %v3949_v48, %v1846_v56 }
 0x2f4   :  { %1912 = vmatpush.msrb.mxu0 %v3949_v48  ;;  %v2811_v48 = vld [vmem:[%s4469_s2 + $0x180] sm:$0xff] }
 0x2f5   :  { %v1848_v59 = vand.u32 4294901760, %v1847_v1  ;;  %v4156_v38 = vand.u32 4294901760, %v2811_v48 }
 0x2f7   :  { %1633 = vrot.lane.b32.xlu0 %v1630_v45, %s2879_s7  ;;  %1639 = vrot.lane.b32.xlu1 %v3700_v15, %s2880_s8  ;;  %v1804_v15 = vand.u32 4294901760, %v3858_v53  ;;  %v1835_v45 = vsub.f32 %v3927_v19, %v1834_v14  ;;  %v2813_v19 = vld [vmem:[%s4469_s2 + $0x190] sm:$0xff]  ;;  %s2884_s7 = smov 29  }
 0x2f8   :  { %1651 = vrot.lane.b32.xlu2 %v3713_v8, %s2882_s10  ;;  %v4119_v1 = vand.u32 4294901760, %v2813_v19 }
 0x2f9   :  { %v1805_v8 = vsub.f32 %v3858_v53, %v1804_v15  ;;  %v1836_v49 = vand.u32 4294901760, %v1835_v45 }
 0x2fb   :  { %v1806_v57 = vand.u32 4294901760, %v1805_v8 }
 0x2fd   :  { %1807 = vmatpush.msrb.mxu3 %v1806_v57  ;;  %v3975_v57 = vand.u32 4294901760, %v2792_v52 }
 0x2ff   :  { %1653 = vrot.lane.b32.xlu0 %v1650_v35, %s2882_s10  ;;  %1813 = vmatpush.msrb.mxu3 %v1812_v24  ;;  %v1840_v35 = vand.u32 4294901760, %v3942_v40  ;;  %v3984_v27 = vsub.f32 %v2792_v52, %v3975_v57 }
 0x300   :  { %1646 = vrot.lane.b32.xlu2 %v1643_v54, %s2881_s9  ;;  %v3960_v54 = vand.u32 4294901760, %v2793_v9 }
 0x301   :  { %1819 = vmatpush.msrb.mxu3 %v1818_v34  ;;  %v1841_v8 = vsub.f32 %v3942_v40, %v1840_v35  ;;  %v1858_v63 = vand.u32 4294901760, %v3984_v27  ;;  %v2812_v40 = vld [vmem:[%s4469_s2 + $0x188] sm:$0xff] }
 0x302   :  { %v3973_v41 = vsub.f32 %v2793_v9, %v3960_v54  ;;  %1746 = vmatpush.msrb.mxu2 %v3960_v54  ;;  %1959 = vmatpush.msrb.mxu1 %v3960_v54  ;;  %v4088_v9 = vand.u32 4294901760, %v2815_v18 }
 0x303   :  { %1825 = vmatpush.msrb.mxu3 %v1824_v42  ;;  %v1842_v2 = vand.u32 4294901760, %v1841_v8  ;;  %v1859_v42 = vsub.f32 %v3984_v27, %v1858_v63 }
 0x304   :  { %v1852_v24 = vand.u32 4294901760, %v3973_v41  ;;  %1748 = vmatpush.msrb.mxu2 %v3975_v57  ;;  %1961 = vmatpush.msrb.mxu1 %v3975_v57 }
 0x305   :  { %1831 = vmatpush.msrb.mxu3 %v1830_v10  ;;  %1915 = vmatpush.msrb.mxu0 %v3973_v41  ;;  %v1860_v13 = vand.u32 4294901760, %v1859_v42  ;;  %v4103_v10 = vsub.f32 %v2815_v18, %v4088_v9 }
 0x306   :  { %v1853_v34 = vsub.f32 %v3973_v41, %v1852_v24  ;;  %1978 = vmatpush.msra.mxu2 %v1768_v6  ;;  %v2810_v41 = vld [vmem:[%s4469_s2 + $0x178] sm:$0xff] }
 0x307   :  { %1837 = vmatpush.msrb.mxu3 %v1836_v49  ;;  %1918 = vmatpush.msrb.mxu0 %v3984_v27  ;;  %v2170_v49 = vand.u32 4294901760, %v4103_v10 }
 0x308   :  { %v1854_v17 = vand.u32 4294901760, %v1853_v34  ;;  %1982 = vmatpush.msra.mxu2 %v1774_v11 }
 0x309   :  { %1843 = vmatpush.msrb.mxu3 %v1842_v2  ;;  %2093 = vmatpush.msra.mxu0 %v4017_v23 }
 0x30a   :  { %1986 = vmatpush.msra.mxu2 %v1780_v50  ;;  %v2141_v50 = vsub.f32 %v4026_v12, %v2140_v39 }
 0x30b   :  { %1849 = vmatpush.msrb.mxu3 %v1848_v59  ;;  %v4138_v59 = vand.u32 4294901760, %v2812_v40 }
 0x30c   :  { %1990 = vmatpush.msra.mxu2 %v1786_v43 }
 0x30d   :  { %1855 = vmatpush.msrb.mxu3 %v1854_v17 }
 0x30e   :  { %1994 = vmatpush.msra.mxu2 %v1792_v3 }
 0x30f   :  { %1861 = vmatpush.msrb.mxu3 %v1860_v13  ;;  %v4152_v13 = vsub.f32 %v2812_v40, %v4138_v59 }
 0x310   :  { %1998 = vmatpush.msra.mxu2 %v1798_v5  ;;  %v2142_v5 = vand.u32 4294901760, %v2141_v50 }
 0x311   :  { %2049 = vmatpush.msra.mxu3 %v3735_v31  ;;  %v2819_v31 = vld [vmem:[%s4469_s2 + $0x1c0] sm:$0xff] }
 0x312   :  { %2002 = vmatpush.msra.mxu2 %v1804_v15  ;;  %2143 = vmatpush.msra.mxu1 %v2142_v5  ;;  %v2808_v5 = vld [vmem:[%s4469_s2 + $0x168] sm:$0xff] }
 0x313   :  { %2051 = vmatpush.msra.mxu3 %v3737_v22  ;;  %v4028_v22 = vand.u32 4294901760, %v2819_v31 }
 0x314   :  { %2006 = vmatpush.msra.mxu2 %v1810_v26 }
 0x315   :  { %2053 = vmatpush.msra.mxu3 %v3739_v20  ;;  %v2818_v20 = vld [vmem:[%s4469_s2 + $0x1b8] sm:$0xff]  ;;  %v4039_v6 = vsub.f32 %v2819_v31, %v4028_v22  ;;  %2095 = vmatpush.msra.mxu0 %v4028_v22  ;;  %v2188_v31 = vand.u32 4294901760, %v4152_v13 }
 0x316   :  { %v4041_v11 = vand.u32 4294901760, %v2818_v20  ;;  %2010 = vmatpush.msra.mxu2 %v1816_v44 }
 0x317   :  { %2055 = vmatpush.msra.mxu3 %v3751_v47  ;;  %v2817_v47 = vld [vmem:[%s4469_s2 + $0x1b0] sm:$0xff]  ;;  %v2146_v43 = vand.u32 4294901760, %v4039_v6  ;;  %v2189_v27 = vsub.f32 %v4152_v13, %v2188_v31 }
 0x318   :  { %v4055_v30 = vsub.f32 %v2818_v20, %v4041_v11  ;;  %v4057_v3 = vand.u32 4294901760, %v2817_v47  ;;  %2097 = vmatpush.msra.mxu0 %v4041_v11  ;;  %2014 = vmatpush.msra.mxu2 %v1822_v37  ;;  %v4172_v20 = vand.u32 4294901760, %v2810_v41 }
 0x319   :  { %2057 = vmatpush.msra.mxu3 %v3753_v55  ;;  %v2816_v55 = vld [vmem:[%s4469_s2 + $0x1a8] sm:$0xff]  ;;  %v2147_v53 = vsub.f32 %v4039_v6, %v2146_v43 }
 0x31a   :  { %v2152_v15 = vand.u32 4294901760, %v4055_v30  ;;  %v4071_v33 = vsub.f32 %v2817_v47, %v4057_v3  ;;  %2099 = vmatpush.msra.mxu0 %v4057_v3  ;;  %v4077_v26 = vand.u32 4294901760, %v2816_v55  ;;  %2018 = vmatpush.msra.mxu2 %v1828_v51  ;;  %v2809_v47 = vld [vmem:[%s4469_s2 + $0x170] sm:$0xff] }
 0x31b   :  { %2059 = vmatpush.msra.mxu3 %v3755_v36  ;;  %v2148_v44 = vand.u32 4294901760, %v2147_v53  ;;  %v2190_v53 = vand.u32 4294901760, %v2189_v27 }
 0x31c   :  { %v2153_v21 = vsub.f32 %v4055_v30, %v2152_v15  ;;  %v2158_v37 = vand.u32 4294901760, %v4071_v33  ;;  %2022 = vmatpush.msra.mxu2 %v1834_v14  ;;  %2101 = vmatpush.msra.mxu0 %v4077_v26 }
 0x31d   :  { %2061 = vmatpush.msra.mxu3 %v3852_v32  ;;  %v4092_v32 = vsub.f32 %v2816_v55, %v4077_v26  ;;  %2149 = vmatpush.msra.mxu1 %v2148_v44  ;;  %v4186_v55 = vsub.f32 %v2810_v41, %v4172_v20  ;;  %v4194_v44 = vand.u32 4294901760, %v2808_v5 }
 0x31e   :  { %v2154_v51 = vand.u32 4294901760, %v2153_v21  ;;  %v2159_v45 = vsub.f32 %v4071_v33, %v2158_v37  ;;  %2026 = vmatpush.msra.mxu2 %v1840_v35  ;;  %2103 = vmatpush.msra.mxu0 %v4088_v9  ;;  %v2171_v35 = vsub.f32 %v4103_v10, %v2170_v49 }
 0x31f   :  { %2063 = vmatpush.msra.mxu3 %v3860_v0  ;;  %v4105_v0 = vand.u32 4294901760, %v2814_v28  ;;  %v2164_v52 = vand.u32 4294901760, %v4092_v32  ;;  %v2200_v21 = vand.u32 4294901760, %v4186_v55 }
 0x320   :  { %2155 = vmatpush.msra.mxu1 %v2154_v51  ;;  %v2160_v14 = vand.u32 4294901760, %v2159_v45  ;;  %2030 = vmatpush.msra.mxu2 %v1846_v56  ;;  %v2172_v56 = vand.u32 4294901760, %v2171_v35 }
 0x321   :  { %2065 = vmatpush.msra.mxu3 %v3871_v62  ;;  %v4117_v8 = vsub.f32 %v2814_v28, %v4105_v0  ;;  %v2165_v62 = vsub.f32 %v4092_v32, %v2164_v52  ;;  %2105 = vmatpush.msra.mxu0 %v4105_v0 }
 0x322   :  { %2161 = vmatpush.msra.mxu1 %v2160_v14  ;;  %2034 = vmatpush.msra.mxu2 %v1852_v24 }
 0x323   :  { %2067 = vmatpush.msra.mxu3 %v3886_v29  ;;  %v2176_v2 = vand.u32 4294901760, %v4117_v8  ;;  %v4136_v29 = vsub.f32 %v2813_v19, %v4119_v1  ;;  %v2166_v34 = vand.u32 4294901760, %v2165_v62  ;;  %2107 = vmatpush.msra.mxu0 %v4119_v1  ;;  %v4204_v19 = vsub.f32 %v2808_v5, %v4194_v44 }
 0x324   :  { %2038 = vmatpush.msra.mxu2 %v1858_v63  ;;  %v4180_v63 = vand.u32 4294901760, %v2809_v47  ;;  %v2201_v62 = vsub.f32 %v4186_v55, %v2200_v21 }
 0x325   :  { %2069 = vmatpush.msra.mxu3 %v3903_v60  ;;  %v2177_v17 = vsub.f32 %v4117_v8, %v2176_v2  ;;  %v2182_v42 = vand.u32 4294901760, %v4136_v29  ;;  %2167 = vmatpush.msra.mxu1 %v2166_v34  ;;  %v2212_v34 = vand.u32 4294901760, %v4204_v19 }
 0x326   :  { %2109 = vmatpush.msra.mxu0 %v4138_v59  ;;  %v4192_v18 = vsub.f32 %v2809_v47, %v4180_v63 }
 0x327   :  { %2071 = vmatpush.msra.mxu3 %v3913_v46  ;;  %v2178_v24 = vand.u32 4294901760, %v2177_v17  ;;  %v2183_v58 = vsub.f32 %v4136_v29, %v2182_v42  ;;  %2173 = vmatpush.msra.mxu1 %v2172_v56  ;;  %v4170_v46 = vsub.f32 %v2811_v48, %v4156_v38 }
 0x328   :  { %2111 = vmatpush.msra.mxu0 %v4156_v38  ;;  %v2206_v45 = vand.u32 4294901760, %v4192_v18 }
 0x329   :  { %2073 = vmatpush.msra.mxu3 %v3929_v7  ;;  %v2184_v50 = vand.u32 4294901760, %v2183_v58  ;;  %2179 = vmatpush.msra.mxu1 %v2178_v24  ;;  %v2194_v7 = vand.u32 4294901760, %v4170_v46 }
 0x32a   :  { %v4074_v36 = vpop.permute.xlu2 %1565  ;;  %2113 = vmatpush.msra.mxu0 %v4172_v20  ;;  %v2207_v35 = vsub.f32 %v4192_v18, %v2206_v45 }
 0x32b   :  { %2075 = vmatpush.msra.mxu3 %v3936_v25  ;;  %2185 = vmatpush.msra.mxu1 %v2184_v50  ;;  %v2195_v25 = vsub.f32 %v4170_v46, %v2194_v7 }
 0x32c   :  { %2115 = vmatpush.msra.mxu0 %v4180_v63 }
 0x32d   :  { %2077 = vmatpush.msra.mxu3 %v3960_v54  ;;  %v1657_v54 = vsel %vm769_vm10, %v3674_v61, %v4074_v36  ;;  %2191 = vmatpush.msra.mxu1 %v2190_v53  ;;  %v2196_v14 = vand.u32 4294901760, %v2195_v25  ;;  %v2202_v61 = vand.u32 4294901760, %v2201_v62  ;;  %v2213_v36 = vsub.f32 %v4204_v19, %v2212_v34 }
 0x32e   :  { %2117 = vmatpush.msra.mxu0 %v4194_v44 }
 0x32f   :  { %2079 = vmatpush.msra.mxu3 %v3975_v57  ;;  %2197 = vmatpush.msra.mxu1 %v2196_v14  ;;  %v2208_v57 = vand.u32 4294901760, %v2207_v35  ;;  %v2214_v17 = vand.u32 4294901760, %v2213_v36 }
 0x331   :  { %2203 = vmatpush.msra.mxu1 %v2202_v61 }
 0x332   :  { %v1599_v60 = vpop.permute.xlu2 %1598 }
 0x333   :  { %2209 = vmatpush.msra.mxu1 %v2208_v57 }
 0x335   :  { %2215 = vmatpush.msra.mxu1 %v2214_v17 }
 0x33a   :  { %v1568_v48 = vpop.permute.xlu2 %1567 }
 0x341   :  { %v1588_v28 = vpop.permute.xlu1 %1587  ;;  %v1577_v51 = vpop.permute.xlu0 %1576 }
 0x342   :  { %v1659_v40 = vsel %vm772_vm11, %v1657_v54, %v1577_v51  ;;  %v1601_v5 = vpop.permute.xlu2 %1600 }
 0x343   :  { %v1661_v56 = vsel %vm775_vm12, %v1659_v40, %v1588_v28 }
 0x344   :  { %v1663_v58 = vsel %vm778_vm13, %v1661_v56, %v1599_v60  ;;  %v1658_v60 = vsel %vm769_vm10, %v3677_v16, %v1568_v48 }
 0x349   :  { %v1621_v41 = vpop.permute.xlu1 %1620  ;;  %v1610_v24 = vpop.permute.xlu0 %1609 }
 0x34a   :  { %v1665_v47 = vsel %vm4518_vm2, %v1663_v58, %v1610_v24  ;;  %v1632_v16 = vpop.permute.xlu2 %1631 }
 0x34b   :  { %v1667_v50 = vsel %vm4519_vm3, %v1665_v47, %v1621_v41 }
 0x34c   :  { %v4227_v27 = vand.u32 4294901760, %v1667_v50 }
 0x34e   :  { %v1750_v53 = vsub.f32 %v1667_v50, %v4227_v27  ;;  %1863 = vmatmul.f32.vlgmr.msrb.gmra.mxu3 %v4227_v27 }
 0x34f   :  { %2388 = vmatpush.msrb.mxu3 %v4017_v23 }
 0x350   :  { %1921 = vmatmul.f32.vlgmr.msrb.gmra.mxu0 %v1750_v53  ;;  %v1751_v25 = vand.u32 4294901760, %v1750_v53 }
 0x351   :  { %v1590_v28 = vpop.permute.xlu1 %1589  ;;  %v1579_v51 = vpop.permute.xlu0 %1578  ;;  %2390 = vmatpush.msrb.mxu3 %v4028_v22  ;;  %2230 = vmatpush.msrb.mxu0 %v4026_v12 }
 0x352   :  { %1965 = vmatmul.f32.vlgmr.msrb.gmra.mxu1 %v1751_v25  ;;  %v1752_v54 = vsub.f32 %v1750_v53, %v1751_v25  ;;  %v1660_v14 = vsel %vm772_vm11, %v1658_v60, %v1579_v51  ;;  %vm2768_vm11 = vcmask 261120  }
 0x353   :  { %2392 = vmatpush.msrb.mxu3 %v4041_v11  ;;  %2282 = vmatpush.msrb.mxu1 %v4017_v23  ;;  %v1662_v40 = vsel %vm775_vm12, %v1660_v14, %v1590_v28  ;;  %vm2772_vm12 = vcmask 257024  }
 0x354   :  { %v1753_v62 = vand.u32 4294901760, %v1752_v54  ;;  %2233 = vmatpush.msrb.mxu0 %v4039_v6 }
 0x355   :  { %2394 = vmatpush.msrb.mxu3 %v4057_v3  ;;  %2284 = vmatpush.msrb.mxu1 %v4028_v22  ;;  %v1664_v22 = vsel %vm778_vm13, %v1662_v40, %v1601_v5 }
 0x356   :  { %1754 = vmatmul.f32.vlgmr.msrb.gmra.mxu2 %v1753_v62  ;;  %2236 = vmatpush.msrb.mxu0 %v4055_v30  ;;  %v26_v30 = vld [vmem:[%s4468_s1 + $0x2c] sm:$0x3f] }
 0x357   :  { %2326 = vmatpush.msrb.mxu2 %v2140_v39  ;;  %2396 = vmatpush.msrb.mxu3 %v4077_v26 }
 0x358   :  { %2286 = vmatpush.msrb.mxu1 %v4041_v11  ;;  %2239 = vmatpush.msrb.mxu0 %v4071_v33 }
 0x359   :  { %v4249_v23 = vpop.permute.xlu1 %1622  ;;  %v1612_v35 = vpop.permute.xlu0 %1611  ;;  %2330 = vmatpush.msrb.mxu2 %v2146_v43  ;;  %2398 = vmatpush.msrb.mxu3 %v4088_v9 }
 0x35a   :  { %v1666_v12 = vsel %vm4520_vm4, %v1664_v22, %v1612_v35  ;;  %2288 = vmatpush.msrb.mxu1 %v4057_v3  ;;  %2242 = vmatpush.msrb.mxu0 %v4092_v32  ;;  %v1669_v3 = vsel %vm787_vm0, %v1621_v41, %v1632_v16 }
 0x35b   :  { %v1668_v39 = vsel %vm4521_vm6, %v1666_v12, %v4249_v23  ;;  %2334 = vmatpush.msrb.mxu2 %v2152_v15  ;;  %2400 = vmatpush.msrb.mxu3 %v4105_v0 }
 0x35c   :  { %v4263_v11 = vand.u32 4294901760, %v1668_v39  ;;  %2290 = vmatpush.msrb.mxu1 %v4077_v26  ;;  %2245 = vmatpush.msrb.mxu0 %v4103_v10  ;;  %v2459_v26 = vsel %vm676_vm5, %v26_v30, 0  ;;  %v25_v10 = vld [vmem:[%s4468_s1 + $0x24] sm:$0xff]  ;;  %vm2445_vm5 = vcmask 244736  }
 0x35d   :  { %2338 = vmatpush.msrb.mxu2 %v2158_v37  ;;  %2402 = vmatpush.msrb.mxu3 %v4119_v1  ;;  %v4287_v32 = vand.u32 4294901760, %v2459_v26  ;;  %v4302_v57 = vand.u32 4294901760, %v25_v10 }
 0x35e   :  { %1867 = vmatmul.f32.gmra.mxu3 %v4263_v11  ;;  %v1758_v6 = vsub.f32 %v1668_v39, %v4263_v11  ;;  %2292 = vmatpush.msrb.mxu1 %v4088_v9 }
 0x35f   :  { %2342 = vmatpush.msrb.mxu2 %v2164_v52  ;;  %2404 = vmatpush.msrb.mxu3 %v4138_v59  ;;  %v4300_v61 = vsub.f32 %v2459_v26, %v4287_v32  ;;  %v4316_v56 = vsub.f32 %v25_v10, %v4302_v57 }
 0x360   :  { %1926 = vmatmul.f32.gmra.mxu0 %v1758_v6  ;;  %v1759_v43 = vand.u32 4294901760, %v1758_v6  ;;  %2294 = vmatpush.msrb.mxu1 %v4105_v0  ;;  %v1652_v0 = vpop.permute.xlu2 %1651 }
 0x361   :  { %v1638_v15 = vpop.permute.xlu0 %1637  ;;  %v1645_v33 = vpop.permute.xlu1 %1644  ;;  %2346 = vmatpush.msrb.mxu2 %v2170_v49  ;;  %2406 = vmatpush.msrb.mxu3 %v4156_v38 }
 0x362   :  { %v1671_v37 = vsel %vm790_vm7, %v1669_v3, %v1638_v15  ;;  %1971 = vmatmul.f32.gmra.mxu1 %v1759_v43  ;;  %v1760_v9 = vsub.f32 %v1758_v6, %v1759_v43  ;;  %2248 = vmatpush.msrb.mxu0 %v4117_v8  ;;  %v2846_v15 = vld [vmem:[%s4468_s1 + $0x34] sm:$0x3] }
 0x363   :  { %v1673_v52 = vsel %vm793_vm1, %v1671_v37, %v1645_v33  ;;  %2350 = vmatpush.msrb.mxu2 %v2176_v2  ;;  %2408 = vmatpush.msrb.mxu3 %v4172_v20  ;;  %v24_v2 = vld [vmem:[%s4468_s1 + $0x1c] sm:$0xff]  ;;  %v1707_v33 = vperm.slane %v2846_v15, 1 }
 0x364   :  { %v1675_v49 = vsel %vm796_vm15, %v1673_v52, %v1652_v0  ;;  %v1761_v48 = vand.u32 4294901760, %v1760_v9  ;;  %2296 = vmatpush.msrb.mxu1 %v4119_v1  ;;  %2251 = vmatpush.msrb.mxu0 %v4136_v29  ;;  %v2528_v1 = vand.u32 4294901760, %v4300_v61  ;;  %v4318_v17 = vand.u32 4294901760, %v24_v2  ;;  %v23_v29 = vld [vmem:[%s4468_s1 + $0x14] sm:$0xff] }
 0x365   :  { %v1709_v8 = vsel %vm829_vm14, %v1675_v49, 0  ;;  %2354 = vmatpush.msrb.mxu2 %v2182_v42  ;;  %2410 = vmatpush.msrb.mxu3 %v4180_v63  ;;  %v4341_v58 = vand.u32 4294901760, %v23_v29 }
 0x366   :  { %v4311_v36 = vand.u32 4294901760, %v1709_v8  ;;  %1762 = vmatmul.f32.gmra.mxu2 %v1761_v48  ;;  %2081 = vmatmul.f32.vlgmr.msra.gmra.mxu3 %v4227_v27  ;;  %v2529_v41 = vsub.f32 %v4300_v61, %v2528_v1  ;;  %v4336_v24 = vsub.f32 %v24_v2, %v4318_v17 }
 0x367   :  { %2298 = vmatpush.msrb.mxu1 %v4138_v59  ;;  %2358 = vmatpush.msrb.mxu2 %v2188_v31  ;;  %v2534_v59 = vand.u32 4294901760, %v4316_v56  ;;  %v4356_v53 = vsub.f32 %v23_v29, %v4341_v58 }
 0x368   :  { %v4327_v42 = vsub.f32 %v1709_v8, %v4311_v36  ;;  %2412 = vmatpush.msrb.mxu3 %v4194_v44  ;;  %2254 = vmatpush.msrb.mxu0 %v4152_v13  ;;  %v2530_v47 = vand.u32 4294901760, %v2529_v41 }
 0x369   :  { %v1634_v31 = vpop.permute.xlu0 %1633  ;;  %2300 = vmatpush.msrb.mxu1 %v4156_v38  ;;  %2362 = vmatpush.msrb.mxu2 %v2194_v7  ;;  %v2535_v50 = vsub.f32 %v4316_v56, %v2534_v59  ;;  %v1640_v38 = vpop.permute.xlu1 %1639  ;;  %v2540_v7 = vand.u32 4294901760, %v4336_v24 }
 0x36a   :  { %2217 = vmatmul.f32.vlgmr.msra.gmra.mxu1 %v4311_v36  ;;  %v2120_v13 = vand.u32 4294901760, %v4327_v42  ;;  %2257 = vmatpush.msrb.mxu0 %v4170_v46  ;;  %v1670_v5 = vsel %vm787_vm0, %v4249_v23, %v1634_v31 }
 0x36b   :  { %2302 = vmatpush.msrb.mxu1 %v4172_v20  ;;  %2366 = vmatpush.msrb.mxu2 %v2200_v21  ;;  %v2541_v20 = vsub.f32 %v4336_v24, %v2540_v7  ;;  %v2546_v21 = vand.u32 4294901760, %v4356_v53  ;;  %v1672_v25 = vsel %vm790_vm7, %v1670_v5, %v1640_v38 }
 0x36c   :  { %v2121_v46 = vsub.f32 %v4327_v42, %v2120_v13  ;;  %2260 = vmatpush.msrb.mxu0 %v4186_v55  ;;  %2825 = vmatpush.msra.mxu3 %v2530_v47  ;;  %v2536_v55 = vand.u32 4294901760, %v2535_v50 }
 0x36d   :  { %2304 = vmatpush.msrb.mxu1 %v4180_v63  ;;  %2370 = vmatpush.msrb.mxu2 %v2206_v45  ;;  %v2547_v63 = vsub.f32 %v4356_v53, %v2546_v21  ;;  %v1647_v45 = vpop.permute.xlu2 %1646  ;;  %v2542_v51 = vand.u32 4294901760, %v2541_v20 }
 0x36e   :  { %2040 = vmatmul.f32.vlgmr.msra.gmra.mxu2 %v4227_v27  ;;  %2085 = vmatmul.f32.gmra.mxu3 %v4263_v11  ;;  %v2122_v28 = vand.u32 4294901760, %v2121_v46  ;;  %v1674_v27 = vsel %vm793_vm1, %v1672_v25, %v1647_v45  ;;  %vm4522_vm1 = vcmask 64512  }
 0x36f   :  { %2306 = vmatpush.msrb.mxu1 %v4194_v44  ;;  %2374 = vmatpush.msrb.mxu2 %v2212_v34  ;;  %v2548_v54 = vand.u32 4294901760, %v2547_v63  ;;  %vm4523_vm9 = vmmov %vm4522_vm1 }
 0x370   :  { %2123 = vmatmul.f32.vlgmr.msra.gmra.mxu0 %v2122_v28  ;;  %2826 = vmatpush.msra.mxu3 %v2536_v55  ;;  %vm4524_vm10 = vmmov %vm4522_vm1 }
 0x371   :  { %2531 = vmatpush.msra.mxu1 %v2530_v47  ;;  %v1654_v60 = vpop.permute.xlu0 %1653  ;;  %2263 = vmatpush.msrb.mxu0 %v4192_v18 }
 0x372   :  { %2821 = vmatpush.msra.mxu2 %v4287_v32  ;;  %v1676_v44 = vsel %vm796_vm15, %v1674_v27, %v1654_v60  ;;  %2827 = vmatpush.msra.mxu3 %v2542_v51 }
 0x373   :  { %2537 = vmatpush.msra.mxu1 %v2536_v55  ;;  %v1712_v34 = vsel %vm829_vm14, %v1676_v44, 0  ;;  %2266 = vmatpush.msrb.mxu0 %v4204_v19  ;;  %v650_v19 = vmax.f32 %v3668_v4, 0.0 }
 0x374   :  { %2822 = vmatpush.msra.mxu2 %v4302_v57  ;;  %v2126_v14 = vand.u32 4294901760, %v1712_v34  ;;  %2828 = vmatpush.msra.mxu3 %v2548_v54 }
 0x375   :  { %2543 = vmatpush.msra.mxu1 %v2542_v51  ;;  %2474 = vmatpush.msra.mxu0 %v4287_v32  ;;  %v2426_v23 = vsel %vm4522_vm1, %v650_v19, 0.0 }
 0x376   :  { %2823 = vmatpush.msra.mxu2 %v4318_v17  ;;  %v2127_v18 = vsub.f32 %v1712_v34, %v2126_v14  ;;  %2221 = vmatmul.f32.gmra.mxu1 %v2126_v14  ;;  %v2447_v4 = vsel %vm2445_vm5, %v2426_v23, 0 }
 0x377   :  { %2044 = vmatmul.f32.gmra.mxu2 %v4263_v11  ;;  %2414 = vmatmul.f32.vlgmr.msrb.gmra.mxu3 %v4311_v36  ;;  %v4407_v35 = vand.u32 4294901760, %v2447_v4 }
 0x378   :  { %2549 = vmatpush.msra.mxu1 %v2548_v54  ;;  %v2128_v62 = vand.u32 4294901760, %v2127_v18  ;;  %2476 = vmatpush.msra.mxu0 %v4302_v57 }
 0x379   :  { %2824 = vmatpush.msra.mxu2 %v4341_v58  ;;  %2625 = vmatpush.msrb.mxu3 %v4287_v32  ;;  %v4414_v22 = vsub.f32 %v2447_v4, %v4407_v35 }
 0x37a   :  { %v2129_v40 = vsub.f32 %v2127_v18, %v2128_v62  ;;  %2478 = vmatpush.msra.mxu0 %v4318_v17 }
 0x37b   :  { %2627 = vmatpush.msrb.mxu3 %v4302_v57  ;;  %v2483_v12 = vand.u32 4294901760, %v4414_v22 }
 0x37c   :  { %v2130_v16 = vand.u32 4294901760, %v2129_v40  ;;  %2480 = vmatpush.msra.mxu0 %v4341_v58 }
 0x37d   :  { %2629 = vmatpush.msrb.mxu3 %v4318_v17  ;;  %v2484_v39 = vsub.f32 %v4414_v22, %v2483_v12 }
 0x37e   :  { %2131 = vmatmul.f32.gmra.mxu0 %v2130_v16  ;;  %2310 = vmatmul.f32.vlgmr.msrb.gmra.mxu1 %v2120_v13 }
 0x37f   :  { %2376 = vmatmul.f32.vlgmr.msrb.gmra.mxu2 %v4311_v36  ;;  %2418 = vmatmul.f32.gmra.mxu3 %v2126_v14  ;;  %v2485_v11 = vand.u32 4294901760, %v2484_v39 }
 0x380   :  { %2715 = vmatpush.msrb.mxu1 %v4287_v32  ;;  %2581 = vmatpush.msrb.mxu2 %v4300_v61 }
 0x381   :  { %2631 = vmatpush.msrb.mxu3 %v4341_v58 }
 0x382   :  { %2717 = vmatpush.msrb.mxu1 %v4302_v57  ;;  %2584 = vmatpush.msrb.mxu2 %v4316_v56 }
 0x384   :  { %2719 = vmatpush.msrb.mxu1 %v4318_v17  ;;  %2587 = vmatpush.msrb.mxu2 %v4336_v24  ;;  %v19_v17 = vld [vmem:[%s4467_s0 + $0x20] sm:$0xf]  ;;  %s2885_s0 = smov 8  }
 0x385   :  { %2441 = vrot.lane.b32.xlu2 %v19_v17, %s2884_s7 }
 0x386   :  { %2269 = vmatmul.f32.vlgmr.msrb.gmra.mxu0 %v4327_v42  ;;  %2316 = vmatmul.f32.gmra.mxu1 %v2128_v62 }
 0x387   :  { %2380 = vmatmul.f32.gmra.mxu2 %v2126_v14  ;;  %2721 = vmatpush.msrb.mxu1 %v4341_v58 }
 0x388   :  { %2672 = vmatpush.msrb.mxu0 %v2528_v1  ;;  %2590 = vmatpush.msrb.mxu2 %v4356_v53 }
 0x38a   :  { %2676 = vmatpush.msrb.mxu0 %v2534_v59 }
 0x38c   :  { %2680 = vmatpush.msrb.mxu0 %v2540_v7 }
 0x38e   :  { %2274 = vmatmul.f32.gmra.mxu0 %v2127_v18  ;;  %2551 = vmatmul.f32.vlgmr.msra.gmra.mxu1 %v4407_v35 }
 0x38f   :  { %2684 = vmatpush.msrb.mxu0 %v2546_v21 }
 0x396   :  { %2486 = vmatmul.f32.vlgmr.msra.gmra.mxu0 %v2485_v11 }
 0x3cd   :  { %v1922_v3 = vpop.f32.mrf.mxu0 }
 0x3cf   :  { %v1966_v6 = vpop.f32.mrf.mxu1 }
 0x3d1   :  { %v1864_v43 = vpop.f32.mrf.mxu3 }
 0x3d9   :  { %v1755_v30 = vpop.f32.mrf.mxu2 }
 0x3da   :  { %v1756_v37 = vadd.f32 %v1755_v30, %v1707_v33 }
 0x3dc   :  { %v1865_v52 = vadd.f32 %v1864_v43, %v1756_v37 }
 0x3dd   :  { %v1927_v0 = vpop.f32.mrf.mxu0 }
 0x3de   :  { %v1923_v49 = vadd.f32 %v1922_v3, %v1865_v52 }
 0x3df   :  { %v1972_v26 = vpop.f32.mrf.mxu1  ;;  %v2442_v39 = vpop.permute.xlu2 %2441 }
 0x3e0   :  { %v1967_v36 = vadd.f32 %v1966_v6, %v1923_v49  ;;  %v2444_v43 = vsel %vm2437_vm8, 0.0, %v2442_v39 }
 0x3e1   :  { %v1868_v9 = vpop.f32.mrf.mxu3 }
 0x3e7   :  { %v2218_v48 = vpop.f32.mrf.mxu1 }
 0x3e9   :  { %v1763_v32 = vpop.f32.mrf.mxu2  ;;  %v2082_v57 = vpop.f32.mrf.mxu3 }
 0x3ea   :  { %v1764_v10 = vadd.f32 %v1763_v32, %v1707_v33  ;;  %v2456_v33 = vsel %vm2445_vm5, %v2444_v43, 0 }
 0x3ec   :  { %v1869_v2 = vadd.f32 %v1868_v9, %v1764_v10 }
 0x3ed   :  { %v2124_v8 = vpop.f32.mrf.mxu0 }
 0x3ee   :  { %v1928_v56 = vadd.f32 %v1927_v0, %v1869_v2  ;;  %v2505_v0 = vand.u32 4294901760, %v2456_v33 }
 0x3f0   :  { %v1973_v24 = vadd.f32 %v1972_v26, %v1928_v56 }
 0x3f1   :  { %v2041_v61 = vpop.f32.mrf.mxu2  ;;  %v2086_v31 = vpop.f32.mrf.mxu3 }
 0x3f2   :  { %v2042_v1 = vadd.f32 %v2041_v61, %v1967_v36 }
 0x3f3   :  { %v2222_v29 = vpop.f32.mrf.mxu1 }
 0x3f4   :  { %v2083_v42 = vadd.f32 %v2082_v57, %v2042_v1 }
 0x3f6   :  { %v2125_v13 = vadd.f32 %v2124_v8, %v2083_v42 }
 0x3f8   :  { %v2219_v50 = vadd.f32 %v2218_v48, %v2125_v13  ;;  %v2506_v48 = vsub.f32 %v2456_v33, %v2505_v0  ;;  %v31_v13 = vld [vmem:[%s4468_s1 + $0x3e] sm:$0xff] }
 0x3fa   :  { %v2045_v41 = vpop.f32.mrf.mxu2  ;;  %v2415_v21 = vpop.f32.mrf.mxu3  ;;  %v2507_v8 = vand.u32 4294901760, %v2506_v48 }
 0x3fb   :  { %v2132_v59 = vpop.f32.mrf.mxu0  ;;  %v2046_v58 = vadd.f32 %v2045_v41, %v1973_v24  ;;  %v2311_v5 = vpop.f32.mrf.mxu1 }
 0x3fc   :  { %v2508_v2 = vsub.f32 %v2506_v48, %v2507_v8 }
 0x3fd   :  { %v2087_v47 = vadd.f32 %v2086_v31, %v2046_v58 }
 0x3fe   :  { %v2509_v36 = vand.u32 4294901760, %v2508_v2 }
 0x3ff   :  { %v2133_v46 = vadd.f32 %v2132_v59, %v2087_v47 }
 0x401   :  { %v2223_v28 = vadd.f32 %v2222_v29, %v2133_v46 }
 0x402   :  { %v2377_v53 = vpop.f32.mrf.mxu2  ;;  %v2419_v14 = vpop.f32.mrf.mxu3 }
 0x403   :  { %v2270_v38 = vpop.f32.mrf.mxu0  ;;  %v2317_v60 = vpop.f32.mrf.mxu1 }
 0x404   :  { %v2271_v7 = vadd.f32 %v2270_v38, %v2219_v50 }
 0x406   :  { %v2312_v20 = vadd.f32 %v2311_v5, %v2271_v7 }
 0x408   :  { %v2378_v25 = vadd.f32 %v2377_v53, %v2312_v20 }
 0x40a   :  { %v2416_v55 = vadd.f32 %v2415_v21, %v2378_v25  ;;  %v2381_v34 = vpop.f32.mrf.mxu2  ;;  %v32_v25 = vld [vmem:[%s4468_s1 + $0x46] sm:$0xff] }
 0x40b   :  { %v2275_v63 = vpop.f32.mrf.mxu0  ;;  %v2552_v56 = vpop.f32.mrf.mxu1 }
 0x40c   :  { %v2276_v45 = vadd.f32 %v2275_v63, %v2223_v28  ;;  %v2422_v51 = vmul.f32 0.1, %v2416_v55 }
 0x40e   :  { %v2318_v27 = vadd.f32 %v2317_v60, %v2276_v45  ;;  %v2424_v44 = vmax.f32 %v2416_v55, %v2422_v51 }
 0x410   :  { %v2382_v54 = vadd.f32 %v2381_v34, %v2318_v27  ;;  %2429 = vrot.lane.b32.xlu0 %v2424_v44, %s2885_s0 }
 0x412   :  { %v2420_v18 = vadd.f32 %v2419_v14, %v2382_v54  ;;  %v33_v54 = vld [vmem:[%s4468_s1 + $0x4e] sm:$0xf] }
 0x413   :  { %v2487_v1 = vpop.f32.mrf.mxu0 }
 0x414   :  { %v2423_v62 = vmul.f32 0.1, %v2420_v18 }
 0x416   :  { %v2425_v19 = vmax.f32 %v2420_v18, %v2423_v62 }
 0x418   :  { %2431 = vrot.lane.b32.xlu1 %v2425_v19, %s2885_s0 }
 0x482   :  { %v2430_v40 = vpop.permute.xlu0 %2429 }
 0x483   :  { %v2435_v16 = vsel %vm4523_vm9, 0.0, %v2430_v40 }
 0x484   :  { %v2438_v23 = vsel %vm2437_vm8, %v2435_v16, 0.0 }
 0x485   :  { %v2450_v4 = vsel %vm2445_vm5, %v2438_v23, 0 }
 0x486   :  { %v2489_v11 = vand.u32 4294901760, %v2450_v4 }
 0x488   :  { %v2490_v6 = vsub.f32 %v2450_v4, %v2489_v11  ;;  %2555 = vmatmul.f32.gmra.mxu1 %v2489_v11 }
 0x48a   :  { %v2432_v30 = vpop.permute.xlu1 %2431  ;;  %v2491_v3 = vand.u32 4294901760, %v2490_v6 }
 0x48b   :  { %v2436_v15 = vsel %vm4524_vm10, 0.0, %v2432_v30 }
 0x48c   :  { %v2439_v26 = vsel %vm2437_vm8, %v2436_v15, 0.0  ;;  %v2492_v37 = vsub.f32 %v2490_v6, %v2491_v3 }
 0x48d   :  { %v2453_v9 = vsel %vm2445_vm5, %v2439_v26, 0 }
 0x48e   :  { %v2497_v32 = vand.u32 4294901760, %v2453_v9  ;;  %v2493_v52 = vand.u32 4294901760, %v2492_v37 }
 0x490   :  { %v2498_v10 = vsub.f32 %v2453_v9, %v2497_v32  ;;  %2494 = vmatmul.f32.gmra.mxu0 %v2493_v52  ;;  %2559 = vmatmul.f32.vlgmr.msra.gmra.mxu3 %v2497_v32 }
 0x491   :  { %2723 = vmatmul.f32.vlgmr.msrb.gmra.mxu1 %v4407_v35 }
 0x492   :  { %v2499_v49 = vand.u32 4294901760, %v2498_v10 }
 0x494   :  { %v2500_v61 = vsub.f32 %v2498_v10, %v2499_v49 }
 0x496   :  { %v2501_v57 = vand.u32 4294901760, %v2500_v61 }
 0x498   :  { %2502 = vmatmul.f32.vlgmr.msra.gmra.mxu2 %v2501_v57  ;;  %2563 = vmatmul.f32.gmra.mxu3 %v2505_v0 }
 0x499   :  { %2686 = vmatmul.f32.vlgmr.msrb.gmra.mxu0 %v4407_v35  ;;  %2727 = vmatmul.f32.gmra.mxu1 %v2489_v11 }
 0x4a0   :  { %2510 = vmatmul.f32.gmra.mxu2 %v2509_v36  ;;  %2635 = vmatmul.f32.vlgmr.msrb.gmra.mxu3 %v2483_v12 }
 0x4a1   :  { %2690 = vmatmul.f32.gmra.mxu0 %v2489_v11  ;;  %2731 = vmatmul.f32.gmra.mxu1 %v2497_v32 }
 0x4a8   :  { %2593 = vmatmul.f32.vlgmr.msrb.gmra.mxu2 %v4414_v22  ;;  %2641 = vmatmul.f32.gmra.mxu3 %v2491_v3  ;;  %v30_v22 = vld [vmem:[%s4468_s1 + $0x36] sm:$0xff] }
 0x4a9   :  { %2694 = vmatmul.f32.gmra.mxu0 %v2497_v32  ;;  %2735 = vmatmul.f32.gmra.mxu1 %v2505_v0  ;;  %v2488_v59 = vadd.f32 %v2487_v1, %v30_v22 }
 0x4ab   :  { %v2553_v58 = vadd.f32 %v2552_v56, %v2488_v59 }
 0x4b0   :  { %2598 = vmatmul.f32.gmra.mxu2 %v2490_v6  ;;  %2647 = vmatmul.f32.gmra.mxu3 %v2499_v49 }
 0x4b1   :  { %2698 = vmatmul.f32.gmra.mxu0 %v2505_v0 }
 0x4b8   :  { %2603 = vmatmul.f32.gmra.mxu2 %v2498_v10  ;;  %2653 = vmatmul.f32.gmra.mxu3 %v2507_v8 }
 0x4c0   :  { %2608 = vmatmul.f32.gmra.mxu2 %v2506_v48 }
 0x505   :  { %v2556_v12 = vpop.f32.mrf.mxu1 }
 0x50d   :  { %v2495_v42 = vpop.f32.mrf.mxu0 }
 0x50e   :  { %v2724_v47 = vpop.f32.mrf.mxu1  ;;  %v2496_v38 = vadd.f32 %v2495_v42, %v31_v13 }
 0x510   :  { %v2557_v21 = vadd.f32 %v2556_v12, %v2496_v38 }
 0x513   :  { %v2560_v35 = vpop.f32.mrf.mxu3 }
 0x516   :  { %v2687_v31 = vpop.f32.mrf.mxu0  ;;  %v2728_v45 = vpop.f32.mrf.mxu1 }
 0x51b   :  { %v2503_v17 = vpop.f32.mrf.mxu2  ;;  %v2564_v29 = vpop.f32.mrf.mxu3 }
 0x51c   :  { %v2504_v51 = vadd.f32 %v2503_v17, %v32_v25 }
 0x51e   :  { %v2691_v28 = vpop.f32.mrf.mxu0  ;;  %v2561_v34 = vadd.f32 %v2560_v35, %v2504_v51  ;;  %v2732_v39 = vpop.f32.mrf.mxu1 }
 0x523   :  { %v2511_v41 = vpop.f32.mrf.mxu2  ;;  %v2636_v24 = vpop.f32.mrf.mxu3 }
 0x524   :  { %v2512_v16 = vadd.f32 %v2511_v41, %v33_v54 }
 0x526   :  { %v2695_v40 = vpop.f32.mrf.mxu0  ;;  %v2565_v43 = vadd.f32 %v2564_v29, %v2512_v16  ;;  %v2736_v0 = vpop.f32.mrf.mxu1 }
 0x52b   :  { %v2594_v50 = vpop.f32.mrf.mxu2  ;;  %v2642_v46 = vpop.f32.mrf.mxu3 }
 0x52c   :  { %v2595_v5 = vadd.f32 %v2594_v50, %v2553_v58 }
 0x52e   :  { %v2637_v7 = vadd.f32 %v2636_v24, %v2595_v5  ;;  %v2699_v9 = vpop.f32.mrf.mxu0 }
 0x530   :  { %v2688_v53 = vadd.f32 %v2687_v31, %v2637_v7 }
 0x532   :  { %v2725_v20 = vadd.f32 %v2724_v47, %v2688_v53 }
 0x533   :  { %v2599_v55 = vpop.f32.mrf.mxu2  ;;  %v2648_v14 = vpop.f32.mrf.mxu3 }
 0x534   :  { %2769 = vst.msk [vmem:[#allocation2] sm:$0xff] %vm2768_vm11, %v2725_v20  ;;  %v2600_v63 = vadd.f32 %v2599_v55, %v2557_v21 }
 0x536   :  { %v2643_v60 = vadd.f32 %v2642_v46, %v2600_v63 }
 0x538   :  { %v2692_v27 = vadd.f32 %v2691_v28, %v2643_v60 }
 0x53a   :  { %v2729_v44 = vadd.f32 %v2728_v45, %v2692_v27 }
 0x53b   :  { %v2604_v18 = vpop.f32.mrf.mxu2  ;;  %v2654_v33 = vpop.f32.mrf.mxu3 }
 0x53c   :  { %v2757_v62 = vmul.f32 0.1, %v2729_v44  ;;  %v2605_v19 = vadd.f32 %v2604_v18, %v2561_v34 }
 0x53e   :  { %v2761_v23 = vmax.f32 %v2729_v44, %v2757_v62  ;;  %v2649_v4 = vadd.f32 %v2648_v14, %v2605_v19 }
 0x540   :  { %2770 = vst.msk [vmem:[#allocation2 + $0x8] sm:$0xff] %vm2768_vm11, %v2761_v23  ;;  %v2696_v11 = vadd.f32 %v2695_v40, %v2649_v4 }
 0x542   :  { %v2733_v6 = vadd.f32 %v2732_v39, %v2696_v11 }
 0x543   :  { %v2609_v30 = vpop.f32.mrf.mxu2 }
 0x544   :  { %v2758_v3 = vmul.f32 0.1, %v2733_v6  ;;  %v2610_v15 = vadd.f32 %v2609_v30, %v2565_v43 }
 0x546   :  { %v2762_v26 = vmax.f32 %v2733_v6, %v2758_v3  ;;  %v2655_v37 = vadd.f32 %v2654_v33, %v2610_v15 }
 0x548   :  { %2771 = vst.msk [vmem:[#allocation2 + $0x10] sm:$0xff] %vm2768_vm11, %v2762_v26  ;;  %v2700_v32 = vadd.f32 %v2699_v9, %v2655_v37 }
 0x54a   :  { %v2737_v52 = vadd.f32 %v2736_v0, %v2700_v32 }
 0x54c   :  { %2773 = vst.msk [vmem:[#allocation2 + $0x18] sm:$0xf] %vm2772_vm12, %v2737_v52 }
 0x54d   :  { %2786 = dma.vmem_to_hbm [thread:$0]  %s2779_s22, 512, %s2781_s20, [#allocation3], %s2887_s23, %s2887_s23, %s2885_s0  }
 0x54e   :  { %2871 = dma.done.wait [#allocation3], 512  }
 0x54f   :  { %2872 = vsyncadd [#allocation3], 4294966784 }
 0x550   :  { %2791 = vsyncpa [#allocation3], 1 }

</bundles_post_ra>
